<compile_context>
chip_gen: v7x
topology: tpu7x:2x2x1
jax: 0.10.0
libtpu: 0.0.40
codegen_flags: <defaults>
</compile_context>

<pallas_src>
import jax
import jax.numpy as jnp
import numpy as np
from jax import lax
from jax.experimental import pallas as pl
from jax.experimental.pallas import tpu as pltpu


# --------------------------------------------------------------------------
# Pallas kernel: one sequence chunk per grid step, h/c persistent in scratch
# --------------------------------------------------------------------------
def lstm_seq_kernel(x_ref, wx_ref, wh_ref, b_ref,      # inputs (x/wx/wh bf16, b f32)
                    out_ref, cn_ref,                   # outputs (f32)
                    gx_sc, h_sc, c_sc):                # VMEM scratch
    chunk = pl.program_id(0)
    n_chunks = pl.num_programs(0)

    B, H = h_sc.shape
    TB = gx_sc.shape[0]            # rows in this chunk = S_tile * B
    S_tile = TB // B

    # ---- hoisted input projection for this chunk: ONE bf16 MXU matmul ------
    # (S_tile*B, E) @ (E, 4H) -> f32 accumulation, fused bias add.
    gx_sc[...] = (
        jnp.dot(x_ref[...], wx_ref[...], preferred_element_type=jnp.float32)
        + b_ref[...]
    )

    # zero initial state only at the first chunk; scratch persists across grid
    @pl.when(chunk == 0)
    def _():
        h_sc[...] = jnp.zeros_like(h_sc)
        c_sc[...] = jnp.zeros_like(c_sc)

    # ---- serial recurrence: carry h/c in vregs, only (B,H)@(H,4H) per step --
    def step(t, carry):
        h_prev, c_prev = carry                          # f32 vregs
        row = pl.multiple_of(t * B, 8)                  # B is a multiple of 8
        g_x = gx_sc[pl.ds(row, B), :]                   # (B, 4H) precomputed f32

        gates = g_x + jnp.dot(h_prev.astype(jnp.bfloat16), wh_ref[...],
                              preferred_element_type=jnp.float32)

        # PyTorch gate order: input, forget, cell(g), output.
        # H is a multiple of 128 -> each slice is lane-tile aligned.
        i_g = jax.nn.sigmoid(gates[:, 0 * H:1 * H])
        f_g = jax.nn.sigmoid(gates[:, 1 * H:2 * H])
        g_g = jnp.tanh(gates[:, 2 * H:3 * H])
        o_g = jax.nn.sigmoid(gates[:, 3 * H:4 * H])

        c_new = f_g * c_prev + i_g * g_g
        h_new = o_g * jnp.tanh(c_new)

        # full-lane-width store into the resident chunk output block
        out_ref[pl.ds(row, B), :] = h_new.astype(out_ref.dtype)
        return (h_new, c_new)

    h0 = h_sc[...]
    c0 = c_sc[...]
    h_f, c_f = lax.fori_loop(0, S_tile, step, (h0, c0), unroll=True)

    # spill carry to scratch once per chunk (off the per-step serial path)
    h_sc[...] = h_f
    c_sc[...] = c_f

    @pl.when(chunk == n_chunks - 1)
    def _():
        cn_ref[...] = c_f.astype(cn_ref.dtype)


def lstm_forward_pallas(x_flat, wx, wh, b, seq_len, batch, seq_tile=8):
    """x_flat: (S*B, E) bf16, seq-major, batch padded to a multiple of 8.
    wx: (E,4H) bf16; wh: (H,4H) bf16; b: (1,4H) f32.
    Returns (out (S*B, H) f32, c_n (B, H) f32)."""
    SB, E = x_flat.shape
    S, B = seq_len, batch
    H = wh.shape[0]

    # largest sequence tile <= seq_tile that divides S (padding S would
    # corrupt the final (h_n, c_n), so we keep exact divisibility)
    st = min(seq_tile, S)
    while S % st != 0:
        st -= 1
    n_chunks = S // st
    TB = st * B

    out_shapes = (
        jax.ShapeDtypeStruct((SB, H), jnp.float32),    # all hidden states
        jax.ShapeDtypeStruct((B, H), jnp.float32),     # c_n
    )

    grid_spec = pltpu.PrefetchScalarGridSpec(
        num_scalar_prefetch=0,
        grid=(n_chunks,),
        in_specs=[
            pl.BlockSpec((TB, E), lambda s: (s, 0)),       # x chunk (bf16)
            pl.BlockSpec((E, 4 * H), lambda s: (0, 0)),    # W_ih^T (bf16)
            pl.BlockSpec((H, 4 * H), lambda s: (0, 0)),    # W_hh^T (bf16)
            pl.BlockSpec((1, 4 * H), lambda s: (0, 0)),    # fused bias (f32)
        ],
        out_specs=[
            pl.BlockSpec((TB, H), lambda s: (s, 0)),       # output chunk
            pl.BlockSpec((B, H), lambda s: (0, 0)),        # c_n (resident)
        ],
        scratch_shapes=[
            pltpu.VMEM((TB, 4 * H), jnp.float32),          # per-chunk gates_x
            pltpu.VMEM((B, H), jnp.float32),               # h carry (persists)
            pltpu.VMEM((B, H), jnp.float32),               # c carry (persists)
        ],
    )

    # explicit scoped-VMEM budget (v5e default is only 16 MiB)
    est_bytes = (
        2 * TB * E * 2                      # x chunk, double-buffered, bf16
        + (E + H) * 4 * H * 2 + 4 * H * 4   # weights + bias
        + 2 * TB * H * 4 + B * H * 4        # outputs
        + TB * 4 * H * 4 + 2 * B * H * 4    # scratch
    )
    vmem_limit = int(min(64 * 2**20, max(32 * 2**20, 2 * est_bytes)))

    return pl.pallas_call(
        lstm_seq_kernel,
        out_shape=out_shapes,
        grid_spec=grid_spec,
        compiler_params=pltpu.CompilerParams(
            dimension_semantics=("arbitrary",),            # recurrence is serial
            vmem_limit_bytes=vmem_limit),
    )(x_flat, wx, wh, b)


# --------------------------------------------------------------------------
# Seq2SeqEncoder wrapper (embedding glue + Pallas LSTM)
# --------------------------------------------------------------------------
class Seq2SeqEncoderPallas:
    def __init__(self, vocab_size, embed_dim, hidden_dim, key):
        k_emb, k_wih, k_whh, k_bih, k_bhh = jax.random.split(key, 5)
        bound = 1.0 / np.sqrt(hidden_dim)

        emb = jax.random.normal(k_emb, (vocab_size, embed_dim), jnp.float32)
        # nn.Embedding(padding_idx=0): padding row is zeroed
        self.embedding = emb.at[0].set(0.0)

        # PyTorch nn.LSTM params: W_ih (4H, E), W_hh (4H, H), b_ih, b_hh (4H,)
        w_ih = jax.random.uniform(k_wih, (4 * hidden_dim, embed_dim),
                                  jnp.float32, -bound, bound)
        w_hh = jax.random.uniform(k_whh, (4 * hidden_dim, hidden_dim),
                                  jnp.float32, -bound, bound)
        b_ih = jax.random.uniform(k_bih, (4 * hidden_dim,), jnp.float32, -bound, bound)
        b_hh = jax.random.uniform(k_bhh, (4 * hidden_dim,), jnp.float32, -bound, bound)

        # kernel consumes transposed bf16 weights and the fused f32 bias
        self.wx_bf16 = w_ih.T.astype(jnp.bfloat16)          # (E, 4H)
        self.wh_bf16 = w_hh.T.astype(jnp.bfloat16)          # (H, 4H)
        self.b = (b_ih + b_hh)[None, :]                     # (1, 4H) f32
        self.hidden_dim = hidden_dim

    def __call__(self, token_ids):
        """token_ids: (B,S) int32 -> (output (B,S,H), (h_n (1,B,H), c_n (1,B,H)))."""
        B, S = token_ids.shape
        H = self.hidden_dim

        # TODO(synk): fuse this gather + transpose into the kernel for large S*B*E.
        x_emb = jnp.take(self.embedding, token_ids, axis=0)   # (B, S, E) f32
        x_sb = jnp.transpose(x_emb, (1, 0, 2))                # (S, B, E) seq-major

        # pad batch up to a multiple of 8 sublanes (padded rows are zeros and
        # never interact with real rows: batch rows are independent)
        B_pad = max(8, ((B + 7) // 8) * 8)
        if B_pad != B:
            x_sb = jnp.pad(x_sb, ((0, 0), (0, B_pad - B), (0, 0)))

        x_flat = x_sb.reshape(S * B_pad, -1).astype(jnp.bfloat16)   # (S*B_pad, E)
        out_flat, c_last = lstm_forward_pallas(
            x_flat, self.wx_bf16, self.wh_bf16, self.b, S, B_pad)

        out_sbH = out_flat.reshape(S, B_pad, H)[:, :B, :]     # (S, B, H)
        out = jnp.transpose(out_sbH, (1, 0, 2))               # batch_first
        h_n = out_sbH[-1][None]                               # h_n == output[:, -1]
        c_n = c_last[:B][None]                                # (1, B, H)
        return out, (h_n, c_n)

    # pure-JAX reference with matching precision (bf16 MXU operands, f32 acc)
    def reference(self, token_ids):
        x_emb = jnp.take(self.embedding, token_ids, axis=0)   # (B, S, E)
        B, S, E = x_emb.shape
        H = self.hidden_dim

        x_sb = jnp.transpose(x_emb, (1, 0, 2)).astype(jnp.bfloat16)   # (S, B, E)
        gx = jnp.dot(x_sb.reshape(S * B, E), self.wx_bf16,
                     preferred_element_type=jnp.float32) + self.b
        gx = gx.reshape(S, B, 4 * H)

        def step(carry, g_x):
            h, c = carry
            gates = g_x + jnp.dot(h.astype(jnp.bfloat16), self.wh_bf16,
                                  preferred_element_type=jnp.float32)
            i = jax.nn.sigmoid(gates[:, 0 * H:1 * H])
            f = jax.nn.sigmoid(gates[:, 1 * H:2 * H])
            g = jnp.tanh(gates[:, 2 * H:3 * H])
            o = jax.nn.sigmoid(gates[:, 3 * H:4 * H])
            c = f * c + i * g
            h = o * jnp.tanh(c)
            return (h, c), h

        init = (jnp.zeros((B, H), jnp.float32), jnp.zeros((B, H), jnp.float32))
        (h_n, c_n), outs = lax.scan(step, init, gx)
        return jnp.transpose(outs, (1, 0, 2)), (h_n[None], c_n[None])


# --------------------------------------------------------------------------
if __name__ == "__main__":
    # H multiple of 128 -> lane-aligned gate slices & lane-dense output stores
    VOCAB, EMBED, HIDDEN = 64, 32, 128
    B, S = 2, 8

    key = jax.random.PRNGKey(0)
    k_model, k_data = jax.random.split(key)

    model = Seq2SeqEncoderPallas(VOCAB, EMBED, HIDDEN, k_model)
    token_ids = jax.random.randint(k_data, (B, S), 0, VOCAB, dtype=jnp.int32)

    out, (h_n, c_n) = model(token_ids)
    jax.block_until_ready((out, h_n, c_n))

    # correctness check against matching-precision pure-JAX LSTM reference
    ref_out, (ref_h, ref_c) = model.reference(token_ids)
    assert out.shape == (B, S, HIDDEN)
    assert h_n.shape == (1, B, HIDDEN) and c_n.shape == (1, B, HIDDEN)
    np.testing.assert_allclose(np.asarray(out), np.asarray(ref_out), atol=2e-3, rtol=2e-3)
    np.testing.assert_allclose(np.asarray(h_n), np.asarray(ref_h), atol=2e-3, rtol=2e-3)
    np.testing.assert_allclose(np.asarray(c_n), np.asarray(ref_c), atol=2e-3, rtol=2e-3)

    print("KERNEL_OK")
</pallas_src>

<mosaic_0001>
module attributes {stable_mosaic.version = 11 : i64} {
  func.func @lstm_seq_kernel(%arg0: i32, %arg1: memref<64x32xbf16, #tpu.memory_space<vmem>>, %arg2: memref<32x512xbf16, #tpu.memory_space<vmem>>, %arg3: memref<128x512xbf16, #tpu.memory_space<vmem>>, %arg4: memref<1x512xf32, #tpu.memory_space<vmem>>, %arg5: memref<64x128xf32, #tpu.memory_space<vmem>>, %arg6: memref<8x128xf32, #tpu.memory_space<vmem>>, %arg7: memref<64x512xf32, #tpu.memory_space<vmem>>, %arg8: memref<8x128xf32, #tpu.memory_space<vmem>>, %arg9: memref<8x128xf32, #tpu.memory_space<vmem>>) attributes {dimension_semantics = [#tpu.dimension_semantics<arbitrary>], iteration_bounds = array<i64: 1>, scalar_prefetch = 0 : i64, scratch_operands = 3 : i64, tpu.core_type = #tpu.core_type<tc>, window_params = [{transform_indices = @transform_0, window_bounds = array<i64: 64, 32>}, {pipeline_mode = #tpu.pipeline_mode<synchronous>, transform_indices = @transform_1, window_bounds = array<i64: 32, 512>}, {pipeline_mode = #tpu.pipeline_mode<synchronous>, transform_indices = @transform_2, window_bounds = array<i64: 128, 512>}, {pipeline_mode = #tpu.pipeline_mode<synchronous>, transform_indices = @transform_3, window_bounds = array<i64: 1, 512>}, {transform_indices = @transform_4, window_bounds = array<i64: 64, 128>}, {pipeline_mode = #tpu.pipeline_mode<synchronous>, transform_indices = @transform_5, window_bounds = array<i64: 8, 128>}]} {
    %c0 = arith.constant 0 : index
    %c0_0 = arith.constant 0 : index
    %0 = vector.load %arg1[%c0, %c0_0] : memref<64x32xbf16, #tpu.memory_space<vmem>>, vector<64x32xbf16>
    %c0_1 = arith.constant 0 : index
    %c0_2 = arith.constant 0 : index
    %1 = vector.load %arg2[%c0_1, %c0_2] : memref<32x512xbf16, #tpu.memory_space<vmem>>, vector<32x512xbf16>
    %cst = arith.constant dense<0.000000e+00> : vector<64x512xf32>
    %2 = tpu.matmul %0, %1, %cst {dimension_numbers = #tpu.dot_dimension_numbers<[1], [0], [0], [1], [0, 0, 1, 1], [], []>} : vector<64x32xbf16>, vector<32x512xbf16>, vector<64x512xf32> -> vector<64x512xf32>
    %c0_3 = arith.constant 0 : index
    %c0_4 = arith.constant 0 : index
    %3 = vector.load %arg4[%c0_3, %c0_4] : memref<1x512xf32, #tpu.memory_space<vmem>>, vector<1x512xf32>
    %4 = vector.broadcast %3 : vector<1x512xf32> to vector<64x512xf32>
    %5 = arith.addf %2, %4 : vector<64x512xf32>
    %c0_5 = arith.constant 0 : index
    %c0_6 = arith.constant 0 : index
    %6 = vector.load %arg7[%c0_5, %c0_6] : memref<64x512xf32, #tpu.memory_space<vmem>>, vector<64x512xf32>
    tpu.vector_store %arg7[%c0_5, %c0_6], %5 {strides = array<i32>} : memref<64x512xf32, #tpu.memory_space<vmem>>, vector<64x512xf32>,
    %c0_i32 = arith.constant 0 : i32
    %7 = arith.cmpi eq, %arg0, %c0_i32 : i32
    %8 = arith.extui %7 : i1 to i32
    %c0_i32_7 = arith.constant 0 : i32
    %9 = arith.cmpi ne, %8, %c0_i32_7 : i32
    scf.if %9 {
      %cst_91 = arith.constant 0.000000e+00 : f32
      %297 = vector.broadcast %cst_91 : f32 to vector<8x128xf32>
      %c0_92 = arith.constant 0 : index
      %c0_93 = arith.constant 0 : index
      %298 = vector.load %arg8[%c0_92, %c0_93] : memref<8x128xf32, #tpu.memory_space<vmem>>, vector<8x128xf32>
      tpu.vector_store %arg8[%c0_92, %c0_93], %297 {strides = array<i32>} : memref<8x128xf32, #tpu.memory_space<vmem>>, vector<8x128xf32>,
      %cst_94 = arith.constant 0.000000e+00 : f32
      %299 = vector.broadcast %cst_94 : f32 to vector<8x128xf32>
      %c0_95 = arith.constant 0 : index
      %c0_96 = arith.constant 0 : index
      %300 = vector.load %arg9[%c0_95, %c0_96] : memref<8x128xf32, #tpu.memory_space<vmem>>, vector<8x128xf32>
      tpu.vector_store %arg9[%c0_95, %c0_96], %299 {strides = array<i32>} : memref<8x128xf32, #tpu.memory_space<vmem>>, vector<8x128xf32>,
    } else {
    }
    %c0_8 = arith.constant 0 : index
    %c0_9 = arith.constant 0 : index
    %10 = vector.load %arg8[%c0_8, %c0_9] : memref<8x128xf32, #tpu.memory_space<vmem>>, vector<8x128xf32>
    %c0_10 = arith.constant 0 : index
    %c0_11 = arith.constant 0 : index
    %11 = vector.load %arg9[%c0_10, %c0_11] : memref<8x128xf32, #tpu.memory_space<vmem>>, vector<8x128xf32>
    %c0_i32_12 = arith.constant 0 : i32
    %c8_i32 = arith.constant 8 : i32
    %12 = arith.muli %c0_i32_12, %c8_i32 : i32
    %13 = tpu.assume_multiple %12, 8 : i32
    %14 = arith.index_cast %13 : i32 to index
    %c0_13 = arith.constant 0 : index
    %15 = vector.load %arg7[%14, %c0_13] : memref<64x512xf32, #tpu.memory_space<vmem>>, vector<8x512xf32>
    %16 = arith.truncf %10 : vector<8x128xf32> to vector<8x128xbf16>
    %c0_14 = arith.constant 0 : index
    %c0_15 = arith.constant 0 : index
    %17 = vector.load %arg3[%c0_14, %c0_15] : memref<128x512xbf16, #tpu.memory_space<vmem>>, vector<128x512xbf16>
    %cst_16 = arith.constant dense<0.000000e+00> : vector<8x512xf32>
    %18 = tpu.matmul %16, %17, %cst_16 {dimension_numbers = #tpu.dot_dimension_numbers<[1], [0], [0], [1], [0, 0, 1, 1], [], []>} : vector<8x128xbf16>, vector<128x512xbf16>, vector<8x512xf32> -> vector<8x512xf32>
    %19 = arith.addf %15, %18 : vector<8x512xf32>
    %20 = vector.extract_strided_slice %19 {offsets = [0, 0], sizes = [8, 128], strides = [1, 1]} : vector<8x512xf32> to vector<8x128xf32>
    %21 = arith.negf %20 : vector<8x128xf32>
    %22 = math.exp %21 : vector<8x128xf32>
    %cst_17 = arith.constant 1.000000e+00 : f32
    %23 = vector.broadcast %cst_17 : f32 to vector<8x128xf32>
    %24 = arith.addf %23, %22 : vector<8x128xf32>
    %25 = arith.divf %23, %24 : vector<8x128xf32>
    %26 = vector.extract_strided_slice %19 {offsets = [0, 128], sizes = [8, 128], strides = [1, 1]} : vector<8x512xf32> to vector<8x128xf32>
    %27 = arith.negf %26 : vector<8x128xf32>
    %28 = math.exp %27 : vector<8x128xf32>
    %cst_18 = arith.constant 1.000000e+00 : f32
    %29 = vector.broadcast %cst_18 : f32 to vector<8x128xf32>
    %30 = arith.addf %29, %28 : vector<8x128xf32>
    %31 = arith.divf %29, %30 : vector<8x128xf32>
    %32 = vector.extract_strided_slice %19 {offsets = [0, 256], sizes = [8, 128], strides = [1, 1]} : vector<8x512xf32> to vector<8x128xf32>
    %33 = math.tanh %32 : vector<8x128xf32>
    %34 = vector.extract_strided_slice %19 {offsets = [0, 384], sizes = [8, 128], strides = [1, 1]} : vector<8x512xf32> to vector<8x128xf32>
    %35 = arith.negf %34 : vector<8x128xf32>
    %36 = math.exp %35 : vector<8x128xf32>
    %cst_19 = arith.constant 1.000000e+00 : f32
    %37 = vector.broadcast %cst_19 : f32 to vector<8x128xf32>
    %38 = arith.addf %37, %36 : vector<8x128xf32>
    %39 = arith.divf %37, %38 : vector<8x128xf32>
    %40 = arith.mulf %31, %11 : vector<8x128xf32>
    %41 = arith.mulf %25, %33 : vector<8x128xf32>
    %42 = arith.addf %40, %41 : vector<8x128xf32>
    %43 = math.tanh %42 : vector<8x128xf32>
    %44 = arith.mulf %39, %43 : vector<8x128xf32>
    %45 = arith.index_cast %13 : i32 to index
    %c0_20 = arith.constant 0 : index
    %46 = vector.load %arg5[%45, %c0_20] : memref<64x128xf32, #tpu.memory_space<vmem>>, vector<8x128xf32>
    tpu.vector_store %arg5[%45, %c0_20], %44 {strides = array<i32>} : memref<64x128xf32, #tpu.memory_space<vmem>>, vector<8x128xf32>,
    %c1_i32 = arith.constant 1 : i32
    %c8_i32_21 = arith.constant 8 : i32
    %47 = arith.muli %c1_i32, %c8_i32_21 : i32
    %48 = tpu.assume_multiple %47, 8 : i32
    %49 = arith.index_cast %48 : i32 to index
    %c0_22 = arith.constant 0 : index
    %50 = vector.load %arg7[%49, %c0_22] : memref<64x512xf32, #tpu.memory_space<vmem>>, vector<8x512xf32>
    %51 = arith.truncf %44 : vector<8x128xf32> to vector<8x128xbf16>
    %c0_23 = arith.constant 0 : index
    %c0_24 = arith.constant 0 : index
    %52 = vector.load %arg3[%c0_23, %c0_24] : memref<128x512xbf16, #tpu.memory_space<vmem>>, vector<128x512xbf16>
    %cst_25 = arith.constant dense<0.000000e+00> : vector<8x512xf32>
    %53 = tpu.matmul %51, %52, %cst_25 {dimension_numbers = #tpu.dot_dimension_numbers<[1], [0], [0], [1], [0, 0, 1, 1], [], []>} : vector<8x128xbf16>, vector<128x512xbf16>, vector<8x512xf32> -> vector<8x512xf32>
    %54 = arith.addf %50, %53 : vector<8x512xf32>
    %55 = vector.extract_strided_slice %54 {offsets = [0, 0], sizes = [8, 128], strides = [1, 1]} : vector<8x512xf32> to vector<8x128xf32>
    %56 = arith.negf %55 : vector<8x128xf32>
    %57 = math.exp %56 : vector<8x128xf32>
    %cst_26 = arith.constant 1.000000e+00 : f32
    %58 = vector.broadcast %cst_26 : f32 to vector<8x128xf32>
    %59 = arith.addf %58, %57 : vector<8x128xf32>
    %60 = arith.divf %58, %59 : vector<8x128xf32>
    %61 = vector.extract_strided_slice %54 {offsets = [0, 128], sizes = [8, 128], strides = [1, 1]} : vector<8x512xf32> to vector<8x128xf32>
    %62 = arith.negf %61 : vector<8x128xf32>
    %63 = math.exp %62 : vector<8x128xf32>
    %cst_27 = arith.constant 1.000000e+00 : f32
    %64 = vector.broadcast %cst_27 : f32 to vector<8x128xf32>
    %65 = arith.addf %64, %63 : vector<8x128xf32>
    %66 = arith.divf %64, %65 : vector<8x128xf32>
    %67 = vector.extract_strided_slice %54 {offsets = [0, 256], sizes = [8, 128], strides = [1, 1]} : vector<8x512xf32> to vector<8x128xf32>
    %68 = math.tanh %67 : vector<8x128xf32>
    %69 = vector.extract_strided_slice %54 {offsets = [0, 384], sizes = [8, 128], strides = [1, 1]} : vector<8x512xf32> to vector<8x128xf32>
    %70 = arith.negf %69 : vector<8x128xf32>
    %71 = math.exp %70 : vector<8x128xf32>
    %cst_28 = arith.constant 1.000000e+00 : f32
    %72 = vector.broadcast %cst_28 : f32 to vector<8x128xf32>
    %73 = arith.addf %72, %71 : vector<8x128xf32>
    %74 = arith.divf %72, %73 : vector<8x128xf32>
    %75 = arith.mulf %66, %42 : vector<8x128xf32>
    %76 = arith.mulf %60, %68 : vector<8x128xf32>
    %77 = arith.addf %75, %76 : vector<8x128xf32>
    %78 = math.tanh %77 : vector<8x128xf32>
    %79 = arith.mulf %74, %78 : vector<8x128xf32>
    %80 = arith.index_cast %48 : i32 to index
    %c0_29 = arith.constant 0 : index
    %81 = vector.load %arg5[%80, %c0_29] : memref<64x128xf32, #tpu.memory_space<vmem>>, vector<8x128xf32>
    tpu.vector_store %arg5[%80, %c0_29], %79 {strides = array<i32>} : memref<64x128xf32, #tpu.memory_space<vmem>>, vector<8x128xf32>,
    %c2_i32 = arith.constant 2 : i32
    %c8_i32_30 = arith.constant 8 : i32
    %82 = arith.muli %c2_i32, %c8_i32_30 : i32
    %83 = tpu.assume_multiple %82, 8 : i32
    %84 = arith.index_cast %83 : i32 to index
    %c0_31 = arith.constant 0 : index
    %85 = vector.load %arg7[%84, %c0_31] : memref<64x512xf32, #tpu.memory_space<vmem>>, vector<8x512xf32>
    %86 = arith.truncf %79 : vector<8x128xf32> to vector<8x128xbf16>
    %c0_32 = arith.constant 0 : index
    %c0_33 = arith.constant 0 : index
    %87 = vector.load %arg3[%c0_32, %c0_33] : memref<128x512xbf16, #tpu.memory_space<vmem>>, vector<128x512xbf16>
    %cst_34 = arith.constant dense<0.000000e+00> : vector<8x512xf32>
    %88 = tpu.matmul %86, %87, %cst_34 {dimension_numbers = #tpu.dot_dimension_numbers<[1], [0], [0], [1], [0, 0, 1, 1], [], []>} : vector<8x128xbf16>, vector<128x512xbf16>, vector<8x512xf32> -> vector<8x512xf32>
    %89 = arith.addf %85, %88 : vector<8x512xf32>
    %90 = vector.extract_strided_slice %89 {offsets = [0, 0], sizes = [8, 128], strides = [1, 1]} : vector<8x512xf32> to vector<8x128xf32>
    %91 = arith.negf %90 : vector<8x128xf32>
    %92 = math.exp %91 : vector<8x128xf32>
    %cst_35 = arith.constant 1.000000e+00 : f32
    %93 = vector.broadcast %cst_35 : f32 to vector<8x128xf32>
    %94 = arith.addf %93, %92 : vector<8x128xf32>
    %95 = arith.divf %93, %94 : vector<8x128xf32>
    %96 = vector.extract_strided_slice %89 {offsets = [0, 128], sizes = [8, 128], strides = [1, 1]} : vector<8x512xf32> to vector<8x128xf32>
    %97 = arith.negf %96 : vector<8x128xf32>
    %98 = math.exp %97 : vector<8x128xf32>
    %cst_36 = arith.constant 1.000000e+00 : f32
    %99 = vector.broadcast %cst_36 : f32 to vector<8x128xf32>
    %100 = arith.addf %99, %98 : vector<8x128xf32>
    %101 = arith.divf %99, %100 : vector<8x128xf32>
    %102 = vector.extract_strided_slice %89 {offsets = [0, 256], sizes = [8, 128], strides = [1, 1]} : vector<8x512xf32> to vector<8x128xf32>
    %103 = math.tanh %102 : vector<8x128xf32>
    %104 = vector.extract_strided_slice %89 {offsets = [0, 384], sizes = [8, 128], strides = [1, 1]} : vector<8x512xf32> to vector<8x128xf32>
    %105 = arith.negf %104 : vector<8x128xf32>
    %106 = math.exp %105 : vector<8x128xf32>
    %cst_37 = arith.constant 1.000000e+00 : f32
    %107 = vector.broadcast %cst_37 : f32 to vector<8x128xf32>
    %108 = arith.addf %107, %106 : vector<8x128xf32>
    %109 = arith.divf %107, %108 : vector<8x128xf32>
    %110 = arith.mulf %101, %77 : vector<8x128xf32>
    %111 = arith.mulf %95, %103 : vector<8x128xf32>
    %112 = arith.addf %110, %111 : vector<8x128xf32>
    %113 = math.tanh %112 : vector<8x128xf32>
    %114 = arith.mulf %109, %113 : vector<8x128xf32>
    %115 = arith.index_cast %83 : i32 to index
    %c0_38 = arith.constant 0 : index
    %116 = vector.load %arg5[%115, %c0_38] : memref<64x128xf32, #tpu.memory_space<vmem>>, vector<8x128xf32>
    tpu.vector_store %arg5[%115, %c0_38], %114 {strides = array<i32>} : memref<64x128xf32, #tpu.memory_space<vmem>>, vector<8x128xf32>,
    %c3_i32 = arith.constant 3 : i32
    %c8_i32_39 = arith.constant 8 : i32
    %117 = arith.muli %c3_i32, %c8_i32_39 : i32
    %118 = tpu.assume_multiple %117, 8 : i32
    %119 = arith.index_cast %118 : i32 to index
    %c0_40 = arith.constant 0 : index
    %120 = vector.load %arg7[%119, %c0_40] : memref<64x512xf32, #tpu.memory_space<vmem>>, vector<8x512xf32>
    %121 = arith.truncf %114 : vector<8x128xf32> to vector<8x128xbf16>
    %c0_41 = arith.constant 0 : index
    %c0_42 = arith.constant 0 : index
    %122 = vector.load %arg3[%c0_41, %c0_42] : memref<128x512xbf16, #tpu.memory_space<vmem>>, vector<128x512xbf16>
    %cst_43 = arith.constant dense<0.000000e+00> : vector<8x512xf32>
    %123 = tpu.matmul %121, %122, %cst_43 {dimension_numbers = #tpu.dot_dimension_numbers<[1], [0], [0], [1], [0, 0, 1, 1], [], []>} : vector<8x128xbf16>, vector<128x512xbf16>, vector<8x512xf32> -> vector<8x512xf32>
    %124 = arith.addf %120, %123 : vector<8x512xf32>
    %125 = vector.extract_strided_slice %124 {offsets = [0, 0], sizes = [8, 128], strides = [1, 1]} : vector<8x512xf32> to vector<8x128xf32>
    %126 = arith.negf %125 : vector<8x128xf32>
    %127 = math.exp %126 : vector<8x128xf32>
    %cst_44 = arith.constant 1.000000e+00 : f32
    %128 = vector.broadcast %cst_44 : f32 to vector<8x128xf32>
    %129 = arith.addf %128, %127 : vector<8x128xf32>
    %130 = arith.divf %128, %129 : vector<8x128xf32>
    %131 = vector.extract_strided_slice %124 {offsets = [0, 128], sizes = [8, 128], strides = [1, 1]} : vector<8x512xf32> to vector<8x128xf32>
    %132 = arith.negf %131 : vector<8x128xf32>
    %133 = math.exp %132 : vector<8x128xf32>
    %cst_45 = arith.constant 1.000000e+00 : f32
    %134 = vector.broadcast %cst_45 : f32 to vector<8x128xf32>
    %135 = arith.addf %134, %133 : vector<8x128xf32>
    %136 = arith.divf %134, %135 : vector<8x128xf32>
    %137 = vector.extract_strided_slice %124 {offsets = [0, 256], sizes = [8, 128], strides = [1, 1]} : vector<8x512xf32> to vector<8x128xf32>
    %138 = math.tanh %137 : vector<8x128xf32>
    %139 = vector.extract_strided_slice %124 {offsets = [0, 384], sizes = [8, 128], strides = [1, 1]} : vector<8x512xf32> to vector<8x128xf32>
    %140 = arith.negf %139 : vector<8x128xf32>
    %141 = math.exp %140 : vector<8x128xf32>
    %cst_46 = arith.constant 1.000000e+00 : f32
    %142 = vector.broadcast %cst_46 : f32 to vector<8x128xf32>
    %143 = arith.addf %142, %141 : vector<8x128xf32>
    %144 = arith.divf %142, %143 : vector<8x128xf32>
    %145 = arith.mulf %136, %112 : vector<8x128xf32>
    %146 = arith.mulf %130, %138 : vector<8x128xf32>
    %147 = arith.addf %145, %146 : vector<8x128xf32>
    %148 = math.tanh %147 : vector<8x128xf32>
    %149 = arith.mulf %144, %148 : vector<8x128xf32>
    %150 = arith.index_cast %118 : i32 to index
    %c0_47 = arith.constant 0 : index
    %151 = vector.load %arg5[%150, %c0_47] : memref<64x128xf32, #tpu.memory_space<vmem>>, vector<8x128xf32>
    tpu.vector_store %arg5[%150, %c0_47], %149 {strides = array<i32>} : memref<64x128xf32, #tpu.memory_space<vmem>>, vector<8x128xf32>,
    %c4_i32 = arith.constant 4 : i32
    %c8_i32_48 = arith.constant 8 : i32
    %152 = arith.muli %c4_i32, %c8_i32_48 : i32
    %153 = tpu.assume_multiple %152, 8 : i32
    %154 = arith.index_cast %153 : i32 to index
    %c0_49 = arith.constant 0 : index
    %155 = vector.load %arg7[%154, %c0_49] : memref<64x512xf32, #tpu.memory_space<vmem>>, vector<8x512xf32>
    %156 = arith.truncf %149 : vector<8x128xf32> to vector<8x128xbf16>
    %c0_50 = arith.constant 0 : index
    %c0_51 = arith.constant 0 : index
    %157 = vector.load %arg3[%c0_50, %c0_51] : memref<128x512xbf16, #tpu.memory_space<vmem>>, vector<128x512xbf16>
    %cst_52 = arith.constant dense<0.000000e+00> : vector<8x512xf32>
    %158 = tpu.matmul %156, %157, %cst_52 {dimension_numbers = #tpu.dot_dimension_numbers<[1], [0], [0], [1], [0, 0, 1, 1], [], []>} : vector<8x128xbf16>, vector<128x512xbf16>, vector<8x512xf32> -> vector<8x512xf32>
    %159 = arith.addf %155, %158 : vector<8x512xf32>
    %160 = vector.extract_strided_slice %159 {offsets = [0, 0], sizes = [8, 128], strides = [1, 1]} : vector<8x512xf32> to vector<8x128xf32>
    %161 = arith.negf %160 : vector<8x128xf32>
    %162 = math.exp %161 : vector<8x128xf32>
    %cst_53 = arith.constant 1.000000e+00 : f32
    %163 = vector.broadcast %cst_53 : f32 to vector<8x128xf32>
    %164 = arith.addf %163, %162 : vector<8x128xf32>
    %165 = arith.divf %163, %164 : vector<8x128xf32>
    %166 = vector.extract_strided_slice %159 {offsets = [0, 128], sizes = [8, 128], strides = [1, 1]} : vector<8x512xf32> to vector<8x128xf32>
    %167 = arith.negf %166 : vector<8x128xf32>
    %168 = math.exp %167 : vector<8x128xf32>
    %cst_54 = arith.constant 1.000000e+00 : f32
    %169 = vector.broadcast %cst_54 : f32 to vector<8x128xf32>
    %170 = arith.addf %169, %168 : vector<8x128xf32>
    %171 = arith.divf %169, %170 : vector<8x128xf32>
    %172 = vector.extract_strided_slice %159 {offsets = [0, 256], sizes = [8, 128], strides = [1, 1]} : vector<8x512xf32> to vector<8x128xf32>
    %173 = math.tanh %172 : vector<8x128xf32>
    %174 = vector.extract_strided_slice %159 {offsets = [0, 384], sizes = [8, 128], strides = [1, 1]} : vector<8x512xf32> to vector<8x128xf32>
    %175 = arith.negf %174 : vector<8x128xf32>
    %176 = math.exp %175 : vector<8x128xf32>
    %cst_55 = arith.constant 1.000000e+00 : f32
    %177 = vector.broadcast %cst_55 : f32 to vector<8x128xf32>
    %178 = arith.addf %177, %176 : vector<8x128xf32>
    %179 = arith.divf %177, %178 : vector<8x128xf32>
    %180 = arith.mulf %171, %147 : vector<8x128xf32>
    %181 = arith.mulf %165, %173 : vector<8x128xf32>
    %182 = arith.addf %180, %181 : vector<8x128xf32>
    %183 = math.tanh %182 : vector<8x128xf32>
    %184 = arith.mulf %179, %183 : vector<8x128xf32>
    %185 = arith.index_cast %153 : i32 to index
    %c0_56 = arith.constant 0 : index
    %186 = vector.load %arg5[%185, %c0_56] : memref<64x128xf32, #tpu.memory_space<vmem>>, vector<8x128xf32>
    tpu.vector_store %arg5[%185, %c0_56], %184 {strides = array<i32>} : memref<64x128xf32, #tpu.memory_space<vmem>>, vector<8x128xf32>,
    %c5_i32 = arith.constant 5 : i32
    %c8_i32_57 = arith.constant 8 : i32
    %187 = arith.muli %c5_i32, %c8_i32_57 : i32
    %188 = tpu.assume_multiple %187, 8 : i32
    %189 = arith.index_cast %188 : i32 to index
    %c0_58 = arith.constant 0 : index
    %190 = vector.load %arg7[%189, %c0_58] : memref<64x512xf32, #tpu.memory_space<vmem>>, vector<8x512xf32>
    %191 = arith.truncf %184 : vector<8x128xf32> to vector<8x128xbf16>
    %c0_59 = arith.constant 0 : index
    %c0_60 = arith.constant 0 : index
    %192 = vector.load %arg3[%c0_59, %c0_60] : memref<128x512xbf16, #tpu.memory_space<vmem>>, vector<128x512xbf16>
    %cst_61 = arith.constant dense<0.000000e+00> : vector<8x512xf32>
    %193 = tpu.matmul %191, %192, %cst_61 {dimension_numbers = #tpu.dot_dimension_numbers<[1], [0], [0], [1], [0, 0, 1, 1], [], []>} : vector<8x128xbf16>, vector<128x512xbf16>, vector<8x512xf32> -> vector<8x512xf32>
    %194 = arith.addf %190, %193 : vector<8x512xf32>
    %195 = vector.extract_strided_slice %194 {offsets = [0, 0], sizes = [8, 128], strides = [1, 1]} : vector<8x512xf32> to vector<8x128xf32>
    %196 = arith.negf %195 : vector<8x128xf32>
    %197 = math.exp %196 : vector<8x128xf32>
    %cst_62 = arith.constant 1.000000e+00 : f32
    %198 = vector.broadcast %cst_62 : f32 to vector<8x128xf32>
    %199 = arith.addf %198, %197 : vector<8x128xf32>
    %200 = arith.divf %198, %199 : vector<8x128xf32>
    %201 = vector.extract_strided_slice %194 {offsets = [0, 128], sizes = [8, 128], strides = [1, 1]} : vector<8x512xf32> to vector<8x128xf32>
    %202 = arith.negf %201 : vector<8x128xf32>
    %203 = math.exp %202 : vector<8x128xf32>
    %cst_63 = arith.constant 1.000000e+00 : f32
    %204 = vector.broadcast %cst_63 : f32 to vector<8x128xf32>
    %205 = arith.addf %204, %203 : vector<8x128xf32>
    %206 = arith.divf %204, %205 : vector<8x128xf32>
    %207 = vector.extract_strided_slice %194 {offsets = [0, 256], sizes = [8, 128], strides = [1, 1]} : vector<8x512xf32> to vector<8x128xf32>
    %208 = math.tanh %207 : vector<8x128xf32>
    %209 = vector.extract_strided_slice %194 {offsets = [0, 384], sizes = [8, 128], strides = [1, 1]} : vector<8x512xf32> to vector<8x128xf32>
    %210 = arith.negf %209 : vector<8x128xf32>
    %211 = math.exp %210 : vector<8x128xf32>
    %cst_64 = arith.constant 1.000000e+00 : f32
    %212 = vector.broadcast %cst_64 : f32 to vector<8x128xf32>
    %213 = arith.addf %212, %211 : vector<8x128xf32>
    %214 = arith.divf %212, %213 : vector<8x128xf32>
    %215 = arith.mulf %206, %182 : vector<8x128xf32>
    %216 = arith.mulf %200, %208 : vector<8x128xf32>
    %217 = arith.addf %215, %216 : vector<8x128xf32>
    %218 = math.tanh %217 : vector<8x128xf32>
    %219 = arith.mulf %214, %218 : vector<8x128xf32>
    %220 = arith.index_cast %188 : i32 to index
    %c0_65 = arith.constant 0 : index
    %221 = vector.load %arg5[%220, %c0_65] : memref<64x128xf32, #tpu.memory_space<vmem>>, vector<8x128xf32>
    tpu.vector_store %arg5[%220, %c0_65], %219 {strides = array<i32>} : memref<64x128xf32, #tpu.memory_space<vmem>>, vector<8x128xf32>,
    %c6_i32 = arith.constant 6 : i32
    %c8_i32_66 = arith.constant 8 : i32
    %222 = arith.muli %c6_i32, %c8_i32_66 : i32
    %223 = tpu.assume_multiple %222, 8 : i32
    %224 = arith.index_cast %223 : i32 to index
    %c0_67 = arith.constant 0 : index
    %225 = vector.load %arg7[%224, %c0_67] : memref<64x512xf32, #tpu.memory_space<vmem>>, vector<8x512xf32>
    %226 = arith.truncf %219 : vector<8x128xf32> to vector<8x128xbf16>
    %c0_68 = arith.constant 0 : index
    %c0_69 = arith.constant 0 : index
    %227 = vector.load %arg3[%c0_68, %c0_69] : memref<128x512xbf16, #tpu.memory_space<vmem>>, vector<128x512xbf16>
    %cst_70 = arith.constant dense<0.000000e+00> : vector<8x512xf32>
    %228 = tpu.matmul %226, %227, %cst_70 {dimension_numbers = #tpu.dot_dimension_numbers<[1], [0], [0], [1], [0, 0, 1, 1], [], []>} : vector<8x128xbf16>, vector<128x512xbf16>, vector<8x512xf32> -> vector<8x512xf32>
    %229 = arith.addf %225, %228 : vector<8x512xf32>
    %230 = vector.extract_strided_slice %229 {offsets = [0, 0], sizes = [8, 128], strides = [1, 1]} : vector<8x512xf32> to vector<8x128xf32>
    %231 = arith.negf %230 : vector<8x128xf32>
    %232 = math.exp %231 : vector<8x128xf32>
    %cst_71 = arith.constant 1.000000e+00 : f32
    %233 = vector.broadcast %cst_71 : f32 to vector<8x128xf32>
    %234 = arith.addf %233, %232 : vector<8x128xf32>
    %235 = arith.divf %233, %234 : vector<8x128xf32>
    %236 = vector.extract_strided_slice %229 {offsets = [0, 128], sizes = [8, 128], strides = [1, 1]} : vector<8x512xf32> to vector<8x128xf32>
    %237 = arith.negf %236 : vector<8x128xf32>
    %238 = math.exp %237 : vector<8x128xf32>
    %cst_72 = arith.constant 1.000000e+00 : f32
    %239 = vector.broadcast %cst_72 : f32 to vector<8x128xf32>
    %240 = arith.addf %239, %238 : vector<8x128xf32>
    %241 = arith.divf %239, %240 : vector<8x128xf32>
    %242 = vector.extract_strided_slice %229 {offsets = [0, 256], sizes = [8, 128], strides = [1, 1]} : vector<8x512xf32> to vector<8x128xf32>
    %243 = math.tanh %242 : vector<8x128xf32>
    %244 = vector.extract_strided_slice %229 {offsets = [0, 384], sizes = [8, 128], strides = [1, 1]} : vector<8x512xf32> to vector<8x128xf32>
    %245 = arith.negf %244 : vector<8x128xf32>
    %246 = math.exp %245 : vector<8x128xf32>
    %cst_73 = arith.constant 1.000000e+00 : f32
    %247 = vector.broadcast %cst_73 : f32 to vector<8x128xf32>
    %248 = arith.addf %247, %246 : vector<8x128xf32>
    %249 = arith.divf %247, %248 : vector<8x128xf32>
    %250 = arith.mulf %241, %217 : vector<8x128xf32>
    %251 = arith.mulf %235, %243 : vector<8x128xf32>
    %252 = arith.addf %250, %251 : vector<8x128xf32>
    %253 = math.tanh %252 : vector<8x128xf32>
    %254 = arith.mulf %249, %253 : vector<8x128xf32>
    %255 = arith.index_cast %223 : i32 to index
    %c0_74 = arith.constant 0 : index
    %256 = vector.load %arg5[%255, %c0_74] : memref<64x128xf32, #tpu.memory_space<vmem>>, vector<8x128xf32>
    tpu.vector_store %arg5[%255, %c0_74], %254 {strides = array<i32>} : memref<64x128xf32, #tpu.memory_space<vmem>>, vector<8x128xf32>,
    %c7_i32 = arith.constant 7 : i32
    %c8_i32_75 = arith.constant 8 : i32
    %257 = arith.muli %c7_i32, %c8_i32_75 : i32
    %258 = tpu.assume_multiple %257, 8 : i32
    %259 = arith.index_cast %258 : i32 to index
    %c0_76 = arith.constant 0 : index
    %260 = vector.load %arg7[%259, %c0_76] : memref<64x512xf32, #tpu.memory_space<vmem>>, vector<8x512xf32>
    %261 = arith.truncf %254 : vector<8x128xf32> to vector<8x128xbf16>
    %c0_77 = arith.constant 0 : index
    %c0_78 = arith.constant 0 : index
    %262 = vector.load %arg3[%c0_77, %c0_78] : memref<128x512xbf16, #tpu.memory_space<vmem>>, vector<128x512xbf16>
    %cst_79 = arith.constant dense<0.000000e+00> : vector<8x512xf32>
    %263 = tpu.matmul %261, %262, %cst_79 {dimension_numbers = #tpu.dot_dimension_numbers<[1], [0], [0], [1], [0, 0, 1, 1], [], []>} : vector<8x128xbf16>, vector<128x512xbf16>, vector<8x512xf32> -> vector<8x512xf32>
    %264 = arith.addf %260, %263 : vector<8x512xf32>
    %265 = vector.extract_strided_slice %264 {offsets = [0, 0], sizes = [8, 128], strides = [1, 1]} : vector<8x512xf32> to vector<8x128xf32>
    %266 = arith.negf %265 : vector<8x128xf32>
    %267 = math.exp %266 : vector<8x128xf32>
    %cst_80 = arith.constant 1.000000e+00 : f32
    %268 = vector.broadcast %cst_80 : f32 to vector<8x128xf32>
    %269 = arith.addf %268, %267 : vector<8x128xf32>
    %270 = arith.divf %268, %269 : vector<8x128xf32>
    %271 = vector.extract_strided_slice %264 {offsets = [0, 128], sizes = [8, 128], strides = [1, 1]} : vector<8x512xf32> to vector<8x128xf32>
    %272 = arith.negf %271 : vector<8x128xf32>
    %273 = math.exp %272 : vector<8x128xf32>
    %cst_81 = arith.constant 1.000000e+00 : f32
    %274 = vector.broadcast %cst_81 : f32 to vector<8x128xf32>
    %275 = arith.addf %274, %273 : vector<8x128xf32>
    %276 = arith.divf %274, %275 : vector<8x128xf32>
    %277 = vector.extract_strided_slice %264 {offsets = [0, 256], sizes = [8, 128], strides = [1, 1]} : vector<8x512xf32> to vector<8x128xf32>
    %278 = math.tanh %277 : vector<8x128xf32>
    %279 = vector.extract_strided_slice %264 {offsets = [0, 384], sizes = [8, 128], strides = [1, 1]} : vector<8x512xf32> to vector<8x128xf32>
    %280 = arith.negf %279 : vector<8x128xf32>
    %281 = math.exp %280 : vector<8x128xf32>
    %cst_82 = arith.constant 1.000000e+00 : f32
    %282 = vector.broadcast %cst_82 : f32 to vector<8x128xf32>
    %283 = arith.addf %282, %281 : vector<8x128xf32>
    %284 = arith.divf %282, %283 : vector<8x128xf32>
    %285 = arith.mulf %276, %252 : vector<8x128xf32>
    %286 = arith.mulf %270, %278 : vector<8x128xf32>
    %287 = arith.addf %285, %286 : vector<8x128xf32>
    %288 = math.tanh %287 : vector<8x128xf32>
    %289 = arith.mulf %284, %288 : vector<8x128xf32>
    %290 = arith.index_cast %258 : i32 to index
    %c0_83 = arith.constant 0 : index
    %291 = vector.load %arg5[%290, %c0_83] : memref<64x128xf32, #tpu.memory_space<vmem>>, vector<8x128xf32>
    tpu.vector_store %arg5[%290, %c0_83], %289 {strides = array<i32>} : memref<64x128xf32, #tpu.memory_space<vmem>>, vector<8x128xf32>,
    %c8_i32_84 = arith.constant 8 : i32
    %c0_85 = arith.constant 0 : index
    %c0_86 = arith.constant 0 : index
    %292 = vector.load %arg8[%c0_85, %c0_86] : memref<8x128xf32, #tpu.memory_space<vmem>>, vector<8x128xf32>
    tpu.vector_store %arg8[%c0_85, %c0_86], %289 {strides = array<i32>} : memref<8x128xf32, #tpu.memory_space<vmem>>, vector<8x128xf32>,
    %c0_87 = arith.constant 0 : index
    %c0_88 = arith.constant 0 : index
    %293 = vector.load %arg9[%c0_87, %c0_88] : memref<8x128xf32, #tpu.memory_space<vmem>>, vector<8x128xf32>
    tpu.vector_store %arg9[%c0_87, %c0_88], %287 {strides = array<i32>} : memref<8x128xf32, #tpu.memory_space<vmem>>, vector<8x128xf32>,
    %c0_i32_89 = arith.constant 0 : i32
    %294 = arith.cmpi eq, %arg0, %c0_i32_89 : i32
    %295 = arith.extui %294 : i1 to i32
    %c0_i32_90 = arith.constant 0 : i32
    %296 = arith.cmpi ne, %295, %c0_i32_90 : i32
    scf.if %296 {
      %c0_91 = arith.constant 0 : index
      %c0_92 = arith.constant 0 : index
      %297 = vector.load %arg6[%c0_91, %c0_92] : memref<8x128xf32, #tpu.memory_space<vmem>>, vector<8x128xf32>
      tpu.vector_store %arg6[%c0_91, %c0_92], %287 {strides = array<i32>} : memref<8x128xf32, #tpu.memory_space<vmem>>, vector<8x128xf32>,
    } else {
    }
    return
  }
  func.func @transform_0(%arg0: i32) -> (i32, i32) {
    %c0_i32 = arith.constant 0 : i32
    %c0_i32_0 = arith.constant 0 : i32
    return %arg0, %c0_i32 : i32, i32
  }
  func.func @transform_1(%arg0: i32) -> (i32, i32) {
    %c0_i32 = arith.constant 0 : i32
    %c0_i32_0 = arith.constant 0 : i32
    %c0_i32_1 = arith.constant 0 : i32
    return %c0_i32, %c0_i32_0 : i32, i32
  }
  func.func @transform_2(%arg0: i32) -> (i32, i32) {
    %c0_i32 = arith.constant 0 : i32
    %c0_i32_0 = arith.constant 0 : i32
    %c0_i32_1 = arith.constant 0 : i32
    return %c0_i32, %c0_i32_0 : i32, i32
  }
  func.func @transform_3(%arg0: i32) -> (i32, i32) {
    %c0_i32 = arith.constant 0 : i32
    %c0_i32_0 = arith.constant 0 : i32
    %c0_i32_1 = arith.constant 0 : i32
    return %c0_i32, %c0_i32_0 : i32, i32
  }
  func.func @transform_4(%arg0: i32) -> (i32, i32) {
    %c0_i32 = arith.constant 0 : i32
    %c0_i32_0 = arith.constant 0 : i32
    return %arg0, %c0_i32 : i32, i32
  }
  func.func @transform_5(%arg0: i32) -> (i32, i32) {
    %c0_i32 = arith.constant 0 : i32
    %c0_i32_0 = arith.constant 0 : i32
    %c0_i32_1 = arith.constant 0 : i32
    return %c0_i32, %c0_i32_0 : i32, i32
  }
}

</mosaic_0001>

<bundles_post_ra>
// kernel: tpu_custom_call.1
= control target key start
LH: loop header
LB: loop body
LE: loop exit
PB: predicated region body
PF: predicated region fallthrough
CT: control target
= control target key end

     0   :  { %11 = vsyncpa [#allocation6], 0  ;;  %s4186_s0 = inlined_call_operand.vmem [shape: bf16[64,32], index: 0, kind: input, shape index: {}]   ;;  %s4187_s1 = inlined_call_operand.hbm [shape: bf16[32,512], index: 1, kind: input, shape index: {}]   ;;  %s4188_s2 = inlined_call_operand.hbm [shape: bf16[128,512], index: 2, kind: input, shape index: {}]   ;;  %s4189_s3 = inlined_call_operand.vmem [shape: f32[1,512], index: 3, kind: input, shape index: {}]   ;;  %s4190_s4 = inlined_call_operand.hbm [shape: f32[64,128], index: 4, kind: output, shape index: {0}]   ;;  %s4191_s5 = inlined_call_operand.hbm [shape: f32[8,128], index: 5, kind: output, shape index: {1}]  }
   0x1   :  { %12 = vsyncpa [#allocation9], 0 }
   0x2   :  { %13 = vsyncpa [#allocation7], 0 }
   0x3   :  { %14 = vsyncpa [#allocation12], 0  ;;  %s3533_s18 = smov [#allocation5]   ;;  %s3437_s22 = scalar_lea.hbm %s4187_s1, 1024 }
   0x4   :  { %s22_s19 = sshll.u32 %s3533_s18, 4  ;;  %p3438_p0 = scmp.ne.s32.totalorder %s4187_s1, %s3437_s22  ;;  %s23_s19 = int_to_ptr.vmem [resolvable:$true] %s22_s19 }
   0x5   :  { %p3441_p1 = scmp.lt.u32.totalorder %s3437_s22, %s4187_s1 }
   0x7   :  { %p3443_p2 = pnand %p3441_p1, %p3438_p0 }
   0x9   :  { %3446 = shalt.err (!%p3443_p2)
}
   0xa   :  { %s3447_s27 = scalar_lea.vmem %s23_s19, 1024  ;;  %p3452_p4 = scmp.lt.s32.totalorder %s23_s19, %s23_s19 }
   0xb   :  { %p3448_p3 = scmp.ne.s32.totalorder %s23_s19, %s3447_s27  ;;  %p3453_p5 = scmp.lt.s32.totalorder %s3447_s27, %s3447_s27 }
   0xd   :  { %p3454_p6 = por %p3453_p5, %p3452_p4 }
   0xf   :  { %p3455_p7 = pnand %p3454_p6, %p3448_p3 }
  0x11   :  { %3458 = shalt.err (!%p3455_p7)
}
  0x12   :  { %s3534_s28 = smov 256   ;;  %s3535_s29 = smov 16  }
  0x13   :  { %28 = dma.hbm_to_vmem [thread:$0]  %s4187_s1, 1024, %s23_s19, [#allocation6], %s3534_s28, %s3534_s28, %s3535_s29  }
  0x14   :  { %s3536_s7 = smov [#allocation8]   ;;  %s3459_s11 = scalar_lea.hbm %s4188_s2, 4096 }
  0x15   :  { %s34_s8 = sshll.u32 %s3536_s7, 4  ;;  %p3460_p8 = scmp.ne.s32.totalorder %s4188_s2, %s3459_s11  ;;  %s35_s8 = int_to_ptr.vmem [resolvable:$true] %s34_s8 }
  0x16   :  { %p3463_p9 = scmp.lt.u32.totalorder %s3459_s11, %s4188_s2 }
  0x18   :  { %p3465_p10 = pnand %p3463_p9, %p3460_p8 }
  0x1a   :  { %3468 = shalt.err (!%p3465_p10)
}
  0x1b   :  { %s3469_s16 = scalar_lea.vmem %s35_s8, 4096  ;;  %p3474_p12 = scmp.lt.s32.totalorder %s35_s8, %s35_s8 }
  0x1c   :  { %p3470_p11 = scmp.ne.s32.totalorder %s35_s8, %s3469_s16  ;;  %p3475_p13 = scmp.lt.s32.totalorder %s3469_s16, %s3469_s16 }
  0x1e   :  { %p3476_p0 = por %p3475_p13, %p3474_p12 }
  0x20   :  { %p3477_p1 = pnand %p3476_p0, %p3470_p11 }
  0x22   :  { %3480 = shalt.err (!%p3477_p1)
}
  0x23   :  { %40 = dma.hbm_to_vmem [thread:$0]  %s4188_s2, 4096, %s35_s8, [#allocation9], %s3534_s28, %s3534_s28, %s3535_s29  }
  0x24   :  { %3525 = dma.done.wait [#allocation6], 1024  }
  0x25   :  { %3526 = vsyncadd [#allocation6], 4294966272 }
  0x26   :  { %3527 = dma.done.wait [#allocation9], 4096  }
  0x27   :  { %3528 = vsyncadd [#allocation9], 4294963200  ;;  %v4192_v0 = vmov 0   ;;  %v3197_v1 = vld [vmem:[#allocation5 + $0x4] ss:$16 sps:$4 sm:$0xff]   ;;  %vm148_vm0 = vcmask 261120   ;;  %v68_v46 = vlaneseq }
  0x28   :  { %193 = vmatprep.mubr.bf16.mxu0 %v4192_v0  ;;  %266 = vmatprep.mubr.bf16.mxu1 %v4192_v0  ;;  %v3199_v2 = vld [vmem:[#allocation5 + $0xc] ss:$16 sps:$4 sm:$0xff]   ;;  %v3201_v3 = vld [vmem:[#allocation5] ss:$16 sps:$4 sm:$0xff]   ;;  %v3202_v4 = vld [vmem:[#allocation5 + $0x8] ss:$16 sps:$4 sm:$0xff]  }
  0x29   :  { %161 = vmatprep.subr.bf16.mxu0 %v3197_v1  ;;  %234 = vmatprep.subr.bf16.mxu1 %v3199_v2  ;;  %v3203_v5 = vld [vmem:[#allocation5 + $0x24] ss:$16 sps:$4 sm:$0xff]   ;;  %v3205_v6 = vld [vmem:[#allocation5 + $0x2c] ss:$16 sps:$4 sm:$0xff]   ;;  %v3207_v7 = vld [vmem:[#allocation5 + $0x20] ss:$16 sps:$4 sm:$0xff]  }
  0x2a   :  { %162 = vmatpush1.bf16.msra.mxu0 %v3201_v3  ;;  %235 = vmatpush1.bf16.msra.mxu1 %v3202_v4  ;;  %v3208_v8 = vld [vmem:[#allocation5 + $0x28] ss:$16 sps:$4 sm:$0xff]   ;;  %v3209_v9 = vld [vmem:[%s4186_s0] sm:$0xff]   ;;  %v3608_v13 = vld [vmem:[#allocation8 + $0xc] ss:$16 sps:$4 sm:$0xff]   ;;  %v3538_v45 = vmov 0.0|0.0  }
  0x2b   :  { %163 = vmatprep.subr.bf16.mxu0 %v3203_v5  ;;  %236 = vmatprep.subr.bf16.mxu1 %v3205_v6  ;;  %v3602_v10 = vld [vmem:[#allocation8] ss:$16 sps:$4 sm:$0xff]   ;;  %v3604_v11 = vld [vmem:[#allocation8 + $0x4] ss:$16 sps:$4 sm:$0xff]   ;;  %v3606_v12 = vld [vmem:[#allocation8 + $0x8] ss:$16 sps:$4 sm:$0xff]  }
  0x2c   :  { %v3612_v14 = vld [vmem:[#allocation8 + $0x24] ss:$16 sps:$4 sm:$0xff]   ;;  %v3616_v15 = vld [vmem:[#allocation8 + $0x20] ss:$16 sps:$4 sm:$0xff]   ;;  %v3618_v16 = vld [vmem:[#allocation8 + $0x2c] ss:$16 sps:$4 sm:$0xff]  }
  0x2d   :  { %v3622_v17 = vld [vmem:[#allocation8 + $0x28] ss:$16 sps:$4 sm:$0xff]   ;;  %v3626_v18 = vld [vmem:[#allocation8 + $0x44] ss:$16 sps:$4 sm:$0xff]   ;;  %v3633_v20 = vld [vmem:[#allocation8 + $0x4c] ss:$16 sps:$4 sm:$0xff]  }
  0x2e   :  { %164 = vmatpush1.bf16.msra.mxu0 %v3207_v7  ;;  %237 = vmatpush1.bf16.msra.mxu1 %v3208_v8  ;;  %v3222_v19 = vld [vmem:[%s4186_s0 + $0x8] sm:$0xff]   ;;  %v3637_v21 = vld [vmem:[#allocation8 + $0x40] ss:$16 sps:$4 sm:$0xff]   ;;  %v3643_v23 = vld [vmem:[#allocation8 + $0x64] ss:$16 sps:$4 sm:$0xff]   ;;  %v69_v47 = vshrl.u32 %v68_v46, 7 }
  0x2f   :  { %547 = vmatprep.subr.bf16.mxu0 %v3604_v11  ;;  %588 = vmatprep.subr.bf16.mxu1 %v3608_v13  ;;  %v3639_v22 = vld [vmem:[#allocation8 + $0x48] ss:$16 sps:$4 sm:$0xff]   ;;  %v3645_v24 = vld [vmem:[#allocation8 + $0x6c] ss:$16 sps:$4 sm:$0xff]   ;;  %v3649_v25 = vld [vmem:[#allocation8 + $0x60] ss:$16 sps:$4 sm:$0xff]  }
  0x30   :  { %v3653_v26 = vld [vmem:[#allocation8 + $0x68] ss:$16 sps:$4 sm:$0xff]   ;;  %v3657_v27 = vld [vmem:[#allocation8 + $0x84] ss:$16 sps:$4 sm:$0xff]   ;;  %v3659_v28 = vld [vmem:[#allocation8 + $0x8c] ss:$16 sps:$4 sm:$0xff]  }
  0x31   :  { %2899 = vmatmul.mubr.msk.bf16.vlgmr.msra.gmra.mrb[0].mxu0 %vm148_vm0, %v3209_v9  ;;  %2903 = vmatmul.mubr.msk.bf16.vlgmr.msra.gmra.mrb[0].mxu1 %vm148_vm0, %v3209_v9  ;;  %v3235_v29 = vld [vmem:[%s4186_s0 + $0x10] sm:$0xff]   ;;  %v3668_v31 = vld [vmem:[#allocation8 + $0x88] ss:$16 sps:$4 sm:$0xff]   ;;  %v3676_v33 = vld [vmem:[#allocation8 + $0xac] ss:$16 sps:$4 sm:$0xff]   ;;  %v78_v48 = vsub.s32 2, %v69_v47 }
  0x32   :  { %548 = vmatpush1.bf16.msra.mxu0 %v3602_v10  ;;  %589 = vmatpush1.bf16.msra.mxu1 %v3606_v12  ;;  %v3666_v30 = vld [vmem:[#allocation8 + $0x80] ss:$16 sps:$4 sm:$0xff]   ;;  %v3672_v32 = vld [vmem:[#allocation8 + $0xa4] ss:$16 sps:$4 sm:$0xff]   ;;  %v3682_v35 = vld [vmem:[#allocation8 + $0xa8] ss:$16 sps:$4 sm:$0xff]  }
  0x33   :  { %549 = vmatprep.subr.bf16.mxu0 %v3612_v14  ;;  %590 = vmatprep.subr.bf16.mxu1 %v3618_v16  ;;  %v3680_v34 = vld [vmem:[#allocation8 + $0xa0] ss:$16 sps:$4 sm:$0xff]   ;;  %v3686_v36 = vld [vmem:[#allocation8 + $0xc4] ss:$16 sps:$4 sm:$0xff]   ;;  %v3690_v37 = vld [vmem:[#allocation8 + $0xcc] ss:$16 sps:$4 sm:$0xff]  }
  0x34   :  { %203 = vmatprep.mubr.bf16.mxu0 %v4192_v0  ;;  %276 = vmatprep.mubr.bf16.mxu1 %v4192_v0  ;;  %v3248_v38 = vld [vmem:[%s4186_s0 + $0x18] sm:$0xff]   ;;  %v3697_v39 = vld [vmem:[#allocation8 + $0xc0] ss:$16 sps:$4 sm:$0xff]   ;;  %v3701_v41 = vld [vmem:[#allocation8 + $0xe4] ss:$16 sps:$4 sm:$0xff]   ;;  %v82_v49 = vsub.s32 3, %v69_v47 }
  0x35   :  { %v3699_v40 = vld [vmem:[#allocation8 + $0xc8] ss:$16 sps:$4 sm:$0xff]   ;;  %v3703_v42 = vld [vmem:[#allocation8 + $0xec] ss:$16 sps:$4 sm:$0xff]   ;;  %v3709_v43 = vld [vmem:[#allocation8 + $0xe0] ss:$16 sps:$4 sm:$0xff]  }
  0x36   :  { %550 = vmatpush1.bf16.msra.mxu0 %v3616_v15  ;;  %591 = vmatpush1.bf16.msra.mxu1 %v3622_v17  ;;  %v3711_v44 = vld [vmem:[#allocation8 + $0xe8] ss:$16 sps:$4 sm:$0xff]   ;;  %v70_v50 = vsub.s32 0, %v69_v47  ;;  %v66_v51 = vld [vmem:[%s4189_s3] sm:$0xf]  ;;  %v74_v52 = vsub.s32 1, %v69_v47 }
  0x37   :  { %551 = vmatprep.subr.bf16.mxu0 %v3626_v18  ;;  %592 = vmatprep.subr.bf16.mxu1 %v3633_v20  ;;  %v3762_v53 = vrot.slane %v66_v51, %v78_v48  ;;  %v3768_v56 = vrot.slane %v66_v51, %v82_v49  ;;  %s3539_s3 = smov [#allocation11]  }
  0x38   :  { %v71_v57 = vrot.slane %v66_v51, %v70_v50  ;;  %v75_v60 = vrot.slane %v66_v51, %v74_v52  ;;  %s2866_s26 = sshll.u32 %s3539_s3, 4  ;;  %s2867_s26 = int_to_ptr.vmem [resolvable:$true] %s2866_s26 }
  0x39   :  { %2900 = vmatmul.mubr.msk.bf16.gmra.mrb[4].mxu0 %vm148_vm0, %v3222_v19  ;;  %2904 = vmatmul.mubr.msk.bf16.gmra.mrb[4].mxu1 %vm148_vm0, %v3222_v19  ;;  %s3481_s27 = scalar_lea.vmem %s2867_s26, 128  ;;  %p3486_p3 = scmp.lt.s32.totalorder %s2867_s26, %s2867_s26 }
  0x3a   :  { %552 = vmatpush1.bf16.msra.mxu0 %v3637_v21  ;;  %593 = vmatpush1.bf16.msra.mxu1 %v3639_v22  ;;  %p3482_p2 = scmp.ne.s32.totalorder %s2867_s26, %s3481_s27  ;;  %p3487_p4 = scmp.lt.s32.totalorder %s3481_s27, %s3481_s27 }
  0x3b   :  { %553 = vmatprep.subr.bf16.mxu0 %v3643_v23  ;;  %594 = vmatprep.subr.bf16.mxu1 %v3645_v24 }
  0x3c   :  { %213 = vmatprep.mubr.bf16.mxu0 %v4192_v0  ;;  %286 = vmatprep.mubr.bf16.mxu1 %v4192_v0  ;;  %p3488_p5 = por %p3487_p4, %p3486_p3 }
  0x3e   :  { %554 = vmatpush1.bf16.msra.mxu0 %v3649_v25  ;;  %595 = vmatpush1.bf16.msra.mxu1 %v3653_v26  ;;  %p3489_p6 = pnand %p3488_p5, %p3482_p2 }
  0x3f   :  { %555 = vmatprep.subr.bf16.mxu0 %v3657_v27  ;;  %596 = vmatprep.subr.bf16.mxu1 %v3659_v28 }
  0x41   :  { %2901 = vmatmul.mubr.msk.bf16.gmra.mrb[8].mxu0 %vm148_vm0, %v3235_v29  ;;  %2905 = vmatmul.mubr.msk.bf16.gmra.mrb[8].mxu1 %vm148_vm0, %v3235_v29 }
  0x42   :  { %556 = vmatpush1.bf16.msra.mxu0 %v3666_v30  ;;  %597 = vmatpush1.bf16.msra.mxu1 %v3668_v31 }
  0x43   :  { %557 = vmatprep.subr.bf16.mxu0 %v3672_v32  ;;  %598 = vmatprep.subr.bf16.mxu1 %v3676_v33 }
  0x44   :  { %223 = vmatprep.mubr.bf16.mxu0 %v4192_v0  ;;  %296 = vmatprep.mubr.bf16.mxu1 %v4192_v0 }
  0x46   :  { %558 = vmatpush1.bf16.msra.mxu0 %v3680_v34  ;;  %599 = vmatpush1.bf16.msra.mxu1 %v3682_v35 }
  0x47   :  { %559 = vmatprep.subr.bf16.mxu0 %v3686_v36  ;;  %600 = vmatprep.subr.bf16.mxu1 %v3690_v37 }
  0x49   :  { %2902 = vmatmul.mubr.msk.bf16.gmra.mrb[12].mxu0 %vm148_vm0, %v3248_v38  ;;  %2906 = vmatmul.mubr.msk.bf16.gmra.mrb[12].mxu1 %vm148_vm0, %v3248_v38 }
  0x4a   :  { %560 = vmatpush1.bf16.msra.mxu0 %v3697_v39  ;;  %601 = vmatpush1.bf16.msra.mxu1 %v3699_v40 }
  0x4b   :  { %561 = vmatprep.subr.bf16.mxu0 %v3701_v41  ;;  %602 = vmatprep.subr.bf16.mxu1 %v3703_v42 }
  0x4c   :  { %579 = vmatprep.mubr.bf16.mxu0 %v4192_v0  ;;  %620 = vmatprep.mubr.bf16.mxu1 %v4192_v0 }
  0x4e   :  { %562 = vmatpush1.bf16.msra.mxu0 %v3709_v43  ;;  %603 = vmatpush1.bf16.msra.mxu1 %v3711_v44 }
  0x4f   :  { %858 = vmatprep.subr.bf16.mxu0 %v3604_v11  ;;  %899 = vmatprep.subr.bf16.mxu1 %v3608_v13 }
  0x51   :  { %580 = vmatmul.mubr.bf16.vlgmr.msra.gmra.mrb[16].mxu0 %v3538_v45  ;;  %621 = vmatmul.mubr.bf16.vlgmr.msra.gmra.mrb[16].mxu1 %v3538_v45 }
  0x52   :  { %859 = vmatpush1.bf16.msra.mxu0 %v3602_v10  ;;  %900 = vmatpush1.bf16.msra.mxu1 %v3606_v12 }
  0x53   :  { %860 = vmatprep.subr.bf16.mxu0 %v3612_v14  ;;  %901 = vmatprep.subr.bf16.mxu1 %v3618_v16 }
  0x54   :  { %890 = vmatprep.mubr.bf16.mxu0 %v4192_v0  ;;  %931 = vmatprep.mubr.bf16.mxu1 %v4192_v0 }
  0x56   :  { %861 = vmatpush1.bf16.msra.mxu0 %v3616_v15  ;;  %902 = vmatpush1.bf16.msra.mxu1 %v3622_v17 }
  0x57   :  { %862 = vmatprep.subr.bf16.mxu0 %v3626_v18  ;;  %903 = vmatprep.subr.bf16.mxu1 %v3633_v20 }
  0x5a   :  { %863 = vmatpush1.bf16.msra.mxu0 %v3637_v21  ;;  %904 = vmatpush1.bf16.msra.mxu1 %v3639_v22 }
  0x5b   :  { %864 = vmatprep.subr.bf16.mxu0 %v3643_v23  ;;  %905 = vmatprep.subr.bf16.mxu1 %v3645_v24 }
  0x5e   :  { %865 = vmatpush1.bf16.msra.mxu0 %v3649_v25  ;;  %906 = vmatpush1.bf16.msra.mxu1 %v3653_v26 }
  0x5f   :  { %866 = vmatprep.subr.bf16.mxu0 %v3657_v27  ;;  %907 = vmatprep.subr.bf16.mxu1 %v3659_v28 }
  0x62   :  { %867 = vmatpush1.bf16.msra.mxu0 %v3666_v30  ;;  %908 = vmatpush1.bf16.msra.mxu1 %v3668_v31 }
  0x63   :  { %868 = vmatprep.subr.bf16.mxu0 %v3672_v32  ;;  %909 = vmatprep.subr.bf16.mxu1 %v3676_v33 }
  0x66   :  { %869 = vmatpush1.bf16.msra.mxu0 %v3680_v34  ;;  %910 = vmatpush1.bf16.msra.mxu1 %v3682_v35 }
  0x67   :  { %870 = vmatprep.subr.bf16.mxu0 %v3686_v36  ;;  %911 = vmatprep.subr.bf16.mxu1 %v3690_v37 }
  0x6a   :  { %871 = vmatpush1.bf16.msra.mxu0 %v3697_v39  ;;  %912 = vmatpush1.bf16.msra.mxu1 %v3699_v40 }
  0x6b   :  { %872 = vmatprep.subr.bf16.mxu0 %v3701_v41  ;;  %913 = vmatprep.subr.bf16.mxu1 %v3703_v42 }
  0x6e   :  { %873 = vmatpush1.bf16.msra.mxu0 %v3709_v43  ;;  %914 = vmatpush1.bf16.msra.mxu1 %v3711_v44 }
  0x6f   :  { %1170 = vmatprep.subr.bf16.mxu0 %v3604_v11  ;;  %1211 = vmatprep.subr.bf16.mxu1 %v3608_v13 }
 0x104   :  { %v3764_v54 = vpop.f32.mrb[0].mxu0  ;;  %v3766_v55 = vpop.f32.mrb[0].mxu1 }
 0x105   :  { %v197_v58 = vpop.f32.mrb[1].mxu0  ;;  %v270_v59 = vpop.f32.mrb[1].mxu1 }
 0x106   :  { %v199_v61 = vpop.f32.mrb[2].mxu0  ;;  %v272_v62 = vpop.f32.mrb[2].mxu1 }
 0x107   :  { %v3770_v63 = vadd.f32 %v199_v61, %v71_v57  ;;  %v201_v1 = vpop.f32.mrb[3].mxu0  ;;  %v3773_v2 = vadd.f32 %v272_v62, %v3762_v53  ;;  %v274_v3 = vpop.f32.mrb[3].mxu1 }
 0x108   :  { %v3775_v4 = vadd.f32 %v201_v1, %v75_v60  ;;  %v3778_v5 = vadd.f32 %v274_v3, %v3768_v56 }
 0x10c   :  { %v205_v6 = vpop.f32.mrb[4].mxu0  ;;  %v278_v7 = vpop.f32.mrb[4].mxu1 }
 0x10d   :  { %v3780_v8 = vadd.f32 %v205_v6, %v71_v57  ;;  %v207_v9 = vpop.f32.mrb[5].mxu0  ;;  %v3783_v19 = vadd.f32 %v278_v7, %v3762_v53  ;;  %v280_v29 = vpop.f32.mrb[5].mxu1 }
 0x10e   :  { %v3785_v38 = vadd.f32 %v207_v9, %v75_v60  ;;  %v209_v45 = vpop.f32.mrb[6].mxu0  ;;  %v3788_v46 = vadd.f32 %v280_v29, %v3768_v56  ;;  %v282_v47 = vpop.f32.mrb[6].mxu1 }
 0x10f   :  { %v3790_v48 = vadd.f32 %v209_v45, %v71_v57  ;;  %v211_v49 = vpop.f32.mrb[7].mxu0  ;;  %v3793_v50 = vadd.f32 %v282_v47, %v3762_v53  ;;  %v284_v51 = vpop.f32.mrb[7].mxu1 }
 0x110   :  { %4194 = vst [vmem:[#allocation17_spill] sm:$0xff] %v3788_v46  ;;  %v3795_v52 = vadd.f32 %v211_v49, %v75_v60  ;;  %v3798_v61 = vadd.f32 %v284_v51, %v3768_v56 }
 0x111   :  { %4195 = vst [vmem:[#allocation18_spill] sm:$0xff] %v3790_v48  ;;  %4196 = vst [vmem:[#allocation19_spill] sm:$0xff] %v3793_v50 }
 0x112   :  { %4197 = vst [vmem:[#allocation20_spill] sm:$0xff] %v3795_v52  ;;  %4198 = vst [vmem:[#allocation21_spill] sm:$0xff] %v3798_v61 }
 0x114   :  { %v215_v62 = vpop.f32.mrb[8].mxu0  ;;  %v288_v1 = vpop.f32.mrb[8].mxu1 }
 0x115   :  { %v3800_v3 = vadd.f32 %v215_v62, %v71_v57  ;;  %v217_v6 = vpop.f32.mrb[9].mxu0  ;;  %v3803_v7 = vadd.f32 %v288_v1, %v3762_v53  ;;  %v290_v9 = vpop.f32.mrb[9].mxu1 }
 0x116   :  { %v3805_v29 = vadd.f32 %v217_v6, %v75_v60  ;;  %v219_v45 = vpop.f32.mrb[10].mxu0  ;;  %v3808_v47 = vadd.f32 %v290_v9, %v3768_v56  ;;  %v292_v49 = vpop.f32.mrb[10].mxu1 }
 0x117   :  { %4199 = vst [vmem:[#allocation22_spill] sm:$0xff] %v3800_v3  ;;  %4200 = vst [vmem:[#allocation23_spill] sm:$0xff] %v3803_v7  ;;  %v3810_v0 = vadd.f32 %v219_v45, %v71_v57  ;;  %v221_v51 = vpop.f32.mrb[11].mxu0  ;;  %v3813_v61 = vadd.f32 %v292_v49, %v3762_v53  ;;  %v294_v62 = vpop.f32.mrb[11].mxu1 }
 0x118   :  { %4201 = vst [vmem:[#allocation24_spill] sm:$0xff] %v3805_v29  ;;  %4202 = vst [vmem:[#allocation25_spill] sm:$0xff] %v3808_v47  ;;  %v3815_v3 = vadd.f32 %v221_v51, %v75_v60  ;;  %v3818_v1 = vadd.f32 %v294_v62, %v3768_v56 }
 0x119   :  { %4203 = vst [vmem:[#allocation26_spill] sm:$0xff] %v3810_v0  ;;  %4204 = vst [vmem:[#allocation27_spill] sm:$0xff] %v3813_v61 }
 0x11a   :  { %4205 = vst [vmem:[#allocation28_spill] sm:$0xff] %v3815_v3  ;;  %4206 = vst [vmem:[#allocation29_spill] sm:$0xff] %v3818_v1 }
 0x11c   :  { %v225_v7 = vpop.f32.mrb[12].mxu0  ;;  %v298_v6 = vpop.f32.mrb[12].mxu1 }
 0x11d   :  { %v3820_v29 = vadd.f32 %v225_v7, %v71_v57  ;;  %v227_v52 = vpop.f32.mrb[13].mxu0  ;;  %v3823_v9 = vadd.f32 %v298_v6, %v3762_v53  ;;  %v300_v45 = vpop.f32.mrb[13].mxu1 }
 0x11e   :  { %v3825_v0 = vadd.f32 %v227_v52, %v75_v60  ;;  %v229_v47 = vpop.f32.mrb[14].mxu0  ;;  %v3828_v49 = vadd.f32 %v300_v45, %v3768_v56  ;;  %v302_v51 = vpop.f32.mrb[14].mxu1  ;;  %v196_v52 = vadd.f32 %v3764_v54, %v71_v57  ;;  %v198_v45 = vadd.f32 %v197_v58, %v75_v60 }
 0x11f   :  { %4207 = vst [vmem:[#allocation30_spill] sm:$0xff] %v3820_v29  ;;  %4208 = vst [vmem:[#allocation31_spill] sm:$0xff] %v3823_v9  ;;  %v3830_v3 = vadd.f32 %v229_v47, %v71_v57  ;;  %v231_v62 = vpop.f32.mrb[15].mxu0  ;;  %v3833_v1 = vadd.f32 %v302_v51, %v3762_v53  ;;  %v304_v7 = vpop.f32.mrb[15].mxu1 }
 0x120   :  { %4209 = vst [vmem:[#allocation32_spill] sm:$0xff] %v3825_v0  ;;  %4210 = vst [vmem:[#allocation33_spill] sm:$0xff] %v3828_v49  ;;  %v3835_v29 = vadd.f32 %v231_v62, %v75_v60  ;;  %v3838_v6 = vadd.f32 %v304_v7, %v3768_v56  ;;  %v269_v0 = vadd.f32 %v3766_v55, %v3762_v53 }
 0x121   :  { %4211 = vst [vmem:[#allocation34_spill] sm:$0xff] %v3830_v3  ;;  %4212 = vst [vmem:[#allocation35_spill] sm:$0xff] %v3833_v1  ;;  %v271_v49 = vadd.f32 %v270_v59, %v3768_v56 }
 0x122   :  { %4213 = vst [vmem:[#allocation36_spill] sm:$0xff] %v3835_v29  ;;  %4214 = vst [vmem:[#allocation37_spill] sm:$0xff] %v3838_v6 }
 0x124   :  { %v581_v47 = vpop.f32.mrb[16].mxu0  ;;  %v622_v3 = vpop.f32.mrb[16].mxu1 }
 0x125   :  { %v629_v9 = vadd.f32 %v581_v47, %v196_v52  ;;  %v631_v61 = vadd.f32 %v622_v3, %v269_v0  ;;  %v583_v51 = vpop.f32.mrb[17].mxu0  ;;  %v624_v1 = vpop.f32.mrb[17].mxu1 }
 0x126   :  { %v630_v50 = vadd.f32 %v583_v51, %v198_v45  ;;  %v632_v62 = vadd.f32 %v624_v1, %v271_v49  ;;  %v585_v29 = vpop.f32.mrb[18].mxu0  ;;  %v626_v48 = vpop.f32.mrb[18].mxu1 }
 0x127   :  { %v2939_v7 = vmul.f32 -1.442695, %v629_v9  ;;  %v586_v6 = vpop.f32.mrb[19].mxu0  ;;  %v627_v46 = vpop.f32.mrb[19].mxu1 }
 0x128   :  { %v2940_v54 = vmul.f32 -1.442695, %v630_v50  ;;  %v2941_v53 = vmul.f32 -1.442695, %v632_v62  ;;  %v4215_v6 = vmov 0  }
 0x129   :  { %3309 = vpow2.f32 %v2939_v7 }
 0x12a   :  { %3311 = vpow2.f32 %v2940_v54 }
 0x12b   :  { %3313 = vpow2.f32 %v2941_v53 }
 0x12c   :  { %3315 = vtanh.f32 %v631_v61 }
 0x133   :  { %v3310_v55 = vpop.eup %3309 }
 0x134   :  { %v3312_v57 = vpop.eup %3311  ;;  %v636_v56 = vadd.f32 1.0, %v3310_v55 }
 0x135   :  { %v642_v58 = vadd.f32 1.0, %v3312_v57  ;;  %v3314_v0 = vpop.eup %3313 }
 0x136   :  { %3317 = vrcp.f32 %v636_v56  ;;  %v3316_v59 = vpop.eup %3315  ;;  %v649_v29 = vadd.f32 1.0, %v3314_v0 }
 0x137   :  { %3319 = vrcp.f32 %v642_v58 }
 0x138   :  { %3321 = vrcp.f32 %v649_v29 }
 0x140   :  { %v3318_v60 = vpop.eup %3317 }
 0x141   :  { %v3320_v3 = vpop.eup %3319  ;;  %v653_v48 = vmul.f32 %v3318_v60, %v3316_v59 }
 0x142   :  { %v652_v1 = vmul.f32 0.0, %v3320_v3  ;;  %v3322_v50 = vpop.eup %3321 }
 0x144   :  { %v3844_v46 = vadd.f32 %v653_v48, %v652_v1 }
 0x146   :  { %3323 = vtanh.f32 %v3844_v46 }
 0x150   :  { %v3324_v9 = vpop.eup %3323 }
 0x151   :  { %v656_v49 = vmul.f32 %v3324_v9, %v3322_v50 }
 0x153   :  { %657 = vst [vmem:[#allocation10] sm:$0xff] %v656_v49  ;;  %v665_v61 = vpack.c.bf16 %v656_v49, %v656_v49 }
 0x155   :  { %891 = vmatmul.mubr.bf16.vlgmr.msra.gmra.mrb[20].mxu0 %v665_v61  ;;  %932 = vmatmul.mubr.bf16.vlgmr.msra.gmra.mrb[20].mxu1 %v665_v61 }
 0x156   :  { %1171 = vmatpush1.bf16.msra.mxu0 %v3602_v10  ;;  %1212 = vmatpush1.bf16.msra.mxu1 %v3606_v12 }
 0x157   :  { %1172 = vmatprep.subr.bf16.mxu0 %v3612_v14  ;;  %1213 = vmatprep.subr.bf16.mxu1 %v3618_v16 }
 0x158   :  { %1202 = vmatprep.mubr.bf16.mxu0 %v4215_v6  ;;  %1243 = vmatprep.mubr.bf16.mxu1 %v4215_v6 }
 0x15a   :  { %1173 = vmatpush1.bf16.msra.mxu0 %v3616_v15  ;;  %1214 = vmatpush1.bf16.msra.mxu1 %v3622_v17 }
 0x15b   :  { %1174 = vmatprep.subr.bf16.mxu0 %v3626_v18  ;;  %1215 = vmatprep.subr.bf16.mxu1 %v3633_v20 }
 0x15e   :  { %1175 = vmatpush1.bf16.msra.mxu0 %v3637_v21  ;;  %1216 = vmatpush1.bf16.msra.mxu1 %v3639_v22 }
 0x15f   :  { %1176 = vmatprep.subr.bf16.mxu0 %v3643_v23  ;;  %1217 = vmatprep.subr.bf16.mxu1 %v3645_v24 }
 0x162   :  { %1177 = vmatpush1.bf16.msra.mxu0 %v3649_v25  ;;  %1218 = vmatpush1.bf16.msra.mxu1 %v3653_v26 }
 0x163   :  { %1178 = vmatprep.subr.bf16.mxu0 %v3657_v27  ;;  %1219 = vmatprep.subr.bf16.mxu1 %v3659_v28 }
 0x166   :  { %1179 = vmatpush1.bf16.msra.mxu0 %v3666_v30  ;;  %1220 = vmatpush1.bf16.msra.mxu1 %v3668_v31 }
 0x167   :  { %1180 = vmatprep.subr.bf16.mxu0 %v3672_v32  ;;  %1221 = vmatprep.subr.bf16.mxu1 %v3676_v33 }
 0x16a   :  { %1181 = vmatpush1.bf16.msra.mxu0 %v3680_v34  ;;  %1222 = vmatpush1.bf16.msra.mxu1 %v3682_v35 }
 0x16b   :  { %1182 = vmatprep.subr.bf16.mxu0 %v3686_v36  ;;  %1223 = vmatprep.subr.bf16.mxu1 %v3690_v37 }
 0x16e   :  { %1183 = vmatpush1.bf16.msra.mxu0 %v3697_v39  ;;  %1224 = vmatpush1.bf16.msra.mxu1 %v3699_v40 }
 0x16f   :  { %1184 = vmatprep.subr.bf16.mxu0 %v3701_v41  ;;  %1225 = vmatprep.subr.bf16.mxu1 %v3703_v42 }
 0x172   :  { %1185 = vmatpush1.bf16.msra.mxu0 %v3709_v43  ;;  %1226 = vmatpush1.bf16.msra.mxu1 %v3711_v44 }
 0x173   :  { %1482 = vmatprep.subr.bf16.mxu0 %v3604_v11  ;;  %1523 = vmatprep.subr.bf16.mxu1 %v3608_v13 }
 0x228   :  { %v892_v52 = vpop.f32.mrb[20].mxu0  ;;  %v933_v45 = vpop.f32.mrb[20].mxu1 }
 0x229   :  { %v940_v47 = vadd.f32 %v892_v52, %v3770_v63  ;;  %v942_v51 = vadd.f32 %v933_v45, %v3773_v2  ;;  %v894_v62 = vpop.f32.mrb[21].mxu0  ;;  %v935_v7 = vpop.f32.mrb[21].mxu1 }
 0x22a   :  { %v941_v54 = vadd.f32 %v894_v62, %v3775_v4  ;;  %v943_v53 = vadd.f32 %v935_v7, %v3778_v5  ;;  %v896_v55 = vpop.f32.mrb[22].mxu0  ;;  %v937_v57 = vpop.f32.mrb[22].mxu1  ;;  %v3943_v62 = vld [vmem:[#allocation8 + $0x24] ss:$16 sps:$4 sm:$0xff]   ;;  %v3945_v7 = vld [vmem:[#allocation8 + $0x2c] ss:$16 sps:$4 sm:$0xff]  }
 0x22b   :  { %v2974_v56 = vmul.f32 -1.442695, %v940_v47  ;;  %v897_v58 = vpop.f32.mrb[23].mxu0  ;;  %v938_v0 = vpop.f32.mrb[23].mxu1  ;;  %v3935_v47 = vld [vmem:[#allocation8] ss:$16 sps:$4 sm:$0xff]  }
 0x22c   :  { %v2975_v11 = vmul.f32 -1.442695, %v941_v54  ;;  %v2976_v13 = vmul.f32 -1.442695, %v943_v53  ;;  %v3947_v54 = vld [vmem:[#allocation8 + $0x20] ss:$16 sps:$4 sm:$0xff]  }
 0x22d   :  { %3325 = vpow2.f32 %v2974_v56  ;;  %v3949_v53 = vld [vmem:[#allocation8 + $0x28] ss:$16 sps:$4 sm:$0xff]   ;;  %v3955_v55 = vld [vmem:[#allocation8 + $0x44] ss:$16 sps:$4 sm:$0xff]   ;;  %v3957_v57 = vld [vmem:[#allocation8 + $0x4c] ss:$16 sps:$4 sm:$0xff]  }
 0x22e   :  { %3327 = vpow2.f32 %v2975_v11  ;;  %v3959_v56 = vld [vmem:[#allocation8 + $0x40] ss:$16 sps:$4 sm:$0xff]   ;;  %v3961_v58 = vld [vmem:[#allocation8 + $0x48] ss:$16 sps:$4 sm:$0xff]   ;;  %v3967_v0 = vld [vmem:[#allocation8 + $0x64] ss:$16 sps:$4 sm:$0xff]  }
 0x22f   :  { %3329 = vpow2.f32 %v2976_v13  ;;  %v3969_v11 = vld [vmem:[#allocation8 + $0x6c] ss:$16 sps:$4 sm:$0xff]   ;;  %v3971_v13 = vld [vmem:[#allocation8 + $0x60] ss:$16 sps:$4 sm:$0xff]  }
 0x230   :  { %3331 = vtanh.f32 %v942_v51  ;;  %v3937_v51 = vld [vmem:[#allocation8 + $0x8] ss:$16 sps:$4 sm:$0xff]  }
 0x237   :  { %v3326_v59 = vpop.eup %3325 }
 0x238   :  { %v3328_v60 = vpop.eup %3327  ;;  %v947_v63 = vadd.f32 1.0, %v3326_v59  ;;  %v3973_v59 = vld [vmem:[#allocation8 + $0x68] ss:$16 sps:$4 sm:$0xff]  }
 0x239   :  { %v953_v2 = vadd.f32 1.0, %v3328_v60  ;;  %v3330_v4 = vpop.eup %3329  ;;  %v3979_v60 = vld [vmem:[#allocation8 + $0x84] ss:$16 sps:$4 sm:$0xff]  }
 0x23a   :  { %3333 = vrcp.f32 %v947_v63  ;;  %v3332_v3 = vpop.eup %3331  ;;  %v960_v1 = vadd.f32 1.0, %v3330_v4  ;;  %v3981_v63 = vld [vmem:[#allocation8 + $0x8c] ss:$16 sps:$4 sm:$0xff]   ;;  %v3985_v4 = vld [vmem:[#allocation8 + $0x88] ss:$16 sps:$4 sm:$0xff]  }
 0x23b   :  { %3335 = vrcp.f32 %v953_v2  ;;  %v3983_v2 = vld [vmem:[#allocation8 + $0x80] ss:$16 sps:$4 sm:$0xff]  }
 0x23c   :  { %3337 = vrcp.f32 %v960_v1  ;;  %v4000_v1 = vld [vmem:[#allocation8 + $0xc4] ss:$16 sps:$4 sm:$0xff]  }
 0x244   :  { %v3334_v5 = vpop.eup %3333 }
 0x245   :  { %v3336_v48 = vpop.eup %3335  ;;  %v964_v29 = vmul.f32 %v3334_v5, %v3332_v3  ;;  %v3989_v3 = vld [vmem:[#allocation8 + $0xa4] ss:$16 sps:$4 sm:$0xff]   ;;  %v3993_v5 = vld [vmem:[#allocation8 + $0xa0] ss:$16 sps:$4 sm:$0xff]  }
 0x246   :  { %v963_v50 = vmul.f32 %v3336_v48, %v3844_v46  ;;  %v3338_v49 = vpop.eup %3337  ;;  %v3933_v46 = vld [vmem:[#allocation8 + $0xc] ss:$16 sps:$4 sm:$0xff]   ;;  %v3995_v48 = vld [vmem:[#allocation8 + $0xa8] ss:$16 sps:$4 sm:$0xff]  }
 0x248   :  { %v3886_v9 = vadd.f32 %v964_v29, %v963_v50  ;;  %v3997_v29 = vld [vmem:[#allocation8 + $0xac] ss:$16 sps:$4 sm:$0xff]  }
 0x249   :  { %v4002_v50 = vld [vmem:[#allocation8 + $0xcc] ss:$16 sps:$4 sm:$0xff]  }
 0x24a   :  { %3339 = vtanh.f32 %v3886_v9 }
 0x254   :  { %v3340_v61 = vpop.eup %3339 }
 0x255   :  { %v967_v52 = vmul.f32 %v3340_v61, %v3338_v49  ;;  %v4009_v49 = vld [vmem:[#allocation8 + $0xc8] ss:$16 sps:$4 sm:$0xff]   ;;  %v4013_v61 = vld [vmem:[#allocation8 + $0xe4] ss:$16 sps:$4 sm:$0xff]  }
 0x257   :  { %969 = vst [vmem:[#allocation10 + $0x8] sm:$0xff] %v967_v52  ;;  %v977_v45 = vpack.c.bf16 %v967_v52, %v967_v52  ;;  %v4015_v52 = vld [vmem:[#allocation8 + $0xec] ss:$16 sps:$4 sm:$0xff]  }
 0x259   :  { %1203 = vmatmul.mubr.bf16.vlgmr.msra.gmra.mrb[24].mxu0 %v977_v45  ;;  %1244 = vmatmul.mubr.bf16.vlgmr.msra.gmra.mrb[24].mxu1 %v977_v45  ;;  %v4019_v45 = vld [vmem:[#allocation8 + $0xe0] ss:$16 sps:$4 sm:$0xff]  }
 0x25a   :  { %1483 = vmatpush1.bf16.msra.mxu0 %v3602_v10  ;;  %1524 = vmatpush1.bf16.msra.mxu1 %v3606_v12 }
 0x25b   :  { %1484 = vmatprep.subr.bf16.mxu0 %v3612_v14  ;;  %1525 = vmatprep.subr.bf16.mxu1 %v3618_v16 }
 0x25c   :  { %1514 = vmatprep.mubr.bf16.mxu0 %v4215_v6  ;;  %1555 = vmatprep.mubr.bf16.mxu1 %v4215_v6 }
 0x25e   :  { %1485 = vmatpush1.bf16.msra.mxu0 %v3616_v15  ;;  %1526 = vmatpush1.bf16.msra.mxu1 %v3622_v17 }
 0x25f   :  { %1486 = vmatprep.subr.bf16.mxu0 %v3626_v18  ;;  %1527 = vmatprep.subr.bf16.mxu1 %v3633_v20  ;;  %v4216_v20 = vld [vmem:[#allocation17_spill] sm:$0xff] }
 0x262   :  { %1487 = vmatpush1.bf16.msra.mxu0 %v3637_v21  ;;  %1528 = vmatpush1.bf16.msra.mxu1 %v3639_v22 }
 0x263   :  { %1488 = vmatprep.subr.bf16.mxu0 %v3643_v23  ;;  %1529 = vmatprep.subr.bf16.mxu1 %v3645_v24 }
 0x266   :  { %1489 = vmatpush1.bf16.msra.mxu0 %v3649_v25  ;;  %1530 = vmatpush1.bf16.msra.mxu1 %v3653_v26 }
 0x267   :  { %1490 = vmatprep.subr.bf16.mxu0 %v3657_v27  ;;  %1531 = vmatprep.subr.bf16.mxu1 %v3659_v28 }
 0x26a   :  { %1491 = vmatpush1.bf16.msra.mxu0 %v3666_v30  ;;  %1532 = vmatpush1.bf16.msra.mxu1 %v3668_v31 }
 0x26b   :  { %1492 = vmatprep.subr.bf16.mxu0 %v3672_v32  ;;  %1533 = vmatprep.subr.bf16.mxu1 %v3676_v33 }
 0x26e   :  { %1493 = vmatpush1.bf16.msra.mxu0 %v3680_v34  ;;  %1534 = vmatpush1.bf16.msra.mxu1 %v3682_v35 }
 0x26f   :  { %1494 = vmatprep.subr.bf16.mxu0 %v3686_v36  ;;  %1535 = vmatprep.subr.bf16.mxu1 %v3690_v37 }
 0x272   :  { %1495 = vmatpush1.bf16.msra.mxu0 %v3697_v39  ;;  %1536 = vmatpush1.bf16.msra.mxu1 %v3699_v40 }
 0x273   :  { %1496 = vmatprep.subr.bf16.mxu0 %v3701_v41  ;;  %1537 = vmatprep.subr.bf16.mxu1 %v3703_v42 }
 0x276   :  { %1497 = vmatpush1.bf16.msra.mxu0 %v3709_v43  ;;  %1538 = vmatpush1.bf16.msra.mxu1 %v3711_v44 }
 0x277   :  { %1835 = vmatprep.subr.bf16.mxu1 %v3933_v46 }
 0x32c   :  { %v1204_v10 = vpop.f32.mrb[24].mxu0  ;;  %v1245_v12 = vpop.f32.mrb[24].mxu1 }
 0x32d   :  { %v1252_v14 = vadd.f32 %v1204_v10, %v3780_v8  ;;  %v1254_v15 = vadd.f32 %v1245_v12, %v3783_v19  ;;  %v1206_v16 = vpop.f32.mrb[25].mxu0  ;;  %v1247_v17 = vpop.f32.mrb[25].mxu1  ;;  %v4021_v10 = vld [vmem:[#allocation8 + $0xe8] ss:$16 sps:$4 sm:$0xff]  }
 0x32e   :  { %v1253_v18 = vadd.f32 %v1206_v16, %v3785_v38  ;;  %v1255_v21 = vadd.f32 %v1247_v17, %v4216_v20  ;;  %v1208_v22 = vpop.f32.mrb[26].mxu0  ;;  %v1249_v23 = vpop.f32.mrb[26].mxu1  ;;  %v3931_v38 = vld [vmem:[#allocation8 + $0x4] ss:$16 sps:$4 sm:$0xff]   ;;  %v4218_v17 = vld [vmem:[#allocation19_spill] sm:$0xff] }
 0x32f   :  { %v3009_v24 = vmul.f32 -1.442695, %v1252_v14  ;;  %v1209_v25 = vpop.f32.mrb[27].mxu0  ;;  %v1250_v26 = vpop.f32.mrb[27].mxu1  ;;  %1794 = vmatprep.subr.bf16.mxu0 %v3931_v38  ;;  %v4219_v22 = vld [vmem:[#allocation20_spill] sm:$0xff] }
 0x330   :  { %v3010_v27 = vmul.f32 -1.442695, %v1253_v18  ;;  %v3011_v28 = vmul.f32 -1.442695, %v1255_v21 }
 0x331   :  { %3341 = vpow2.f32 %v3009_v24  ;;  %v4220_v24 = vld [vmem:[#allocation21_spill] sm:$0xff] }
 0x332   :  { %3343 = vpow2.f32 %v3010_v27 }
 0x333   :  { %3345 = vpow2.f32 %v3011_v28 }
 0x334   :  { %3347 = vtanh.f32 %v1254_v15  ;;  %v4217_v15 = vld [vmem:[#allocation18_spill] sm:$0xff] }
 0x33b   :  { %v3342_v30 = vpop.eup %3341 }
 0x33c   :  { %v3344_v31 = vpop.eup %3343  ;;  %v1259_v32 = vadd.f32 1.0, %v3342_v30 }
 0x33d   :  { %v1265_v33 = vadd.f32 1.0, %v3344_v31  ;;  %v3346_v34 = vpop.eup %3345 }
 0x33e   :  { %3349 = vrcp.f32 %v1259_v32  ;;  %v3348_v35 = vpop.eup %3347  ;;  %v1272_v40 = vadd.f32 1.0, %v3346_v34 }
 0x33f   :  { %3351 = vrcp.f32 %v1265_v33 }
 0x340   :  { %3353 = vrcp.f32 %v1272_v40 }
 0x348   :  { %v3350_v36 = vpop.eup %3349 }
 0x349   :  { %v3352_v37 = vpop.eup %3351  ;;  %v1276_v39 = vmul.f32 %v3350_v36, %v3348_v35 }
 0x34a   :  { %v1275_v41 = vmul.f32 %v3352_v37, %v3886_v9  ;;  %v3354_v43 = vpop.eup %3353  ;;  %v4007_v9 = vld [vmem:[#allocation8 + $0xc0] ss:$16 sps:$4 sm:$0xff]  }
 0x34c   :  { %v3926_v42 = vadd.f32 %v1276_v39, %v1275_v41 }
 0x34e   :  { %3355 = vtanh.f32 %v3926_v42 }
 0x358   :  { %v3356_v44 = vpop.eup %3355 }
 0x359   :  { %v1279_v8 = vmul.f32 %v3356_v44, %v3354_v43 }
 0x35b   :  { %1281 = vst [vmem:[#allocation10 + $0x10] sm:$0xff] %v1279_v8  ;;  %v1289_v19 = vpack.c.bf16 %v1279_v8, %v1279_v8 }
 0x35d   :  { %1515 = vmatmul.mubr.bf16.vlgmr.msra.gmra.mrb[28].mxu0 %v1289_v19  ;;  %1556 = vmatmul.mubr.bf16.vlgmr.msra.gmra.mrb[28].mxu1 %v1289_v19 }
 0x35e   :  { %1826 = vmatprep.mubr.bf16.mxu0 %v4215_v6  ;;  %1867 = vmatprep.mubr.bf16.mxu1 %v4215_v6 }
 0x35f   :  { %1795 = vmatpush1.bf16.msra.mxu0 %v3935_v47  ;;  %1836 = vmatpush1.bf16.msra.mxu1 %v3937_v51 }
 0x360   :  { %1796 = vmatprep.subr.bf16.mxu0 %v3943_v62  ;;  %1837 = vmatprep.subr.bf16.mxu1 %v3945_v7 }
 0x363   :  { %1797 = vmatpush1.bf16.msra.mxu0 %v3947_v54  ;;  %1838 = vmatpush1.bf16.msra.mxu1 %v3949_v53 }
 0x364   :  { %1798 = vmatprep.subr.bf16.mxu0 %v3955_v55  ;;  %1839 = vmatprep.subr.bf16.mxu1 %v3957_v57 }
 0x367   :  { %1799 = vmatpush1.bf16.msra.mxu0 %v3959_v56  ;;  %1840 = vmatpush1.bf16.msra.mxu1 %v3961_v58 }
 0x368   :  { %1800 = vmatprep.subr.bf16.mxu0 %v3967_v0  ;;  %1841 = vmatprep.subr.bf16.mxu1 %v3969_v11 }
 0x36b   :  { %1801 = vmatpush1.bf16.msra.mxu0 %v3971_v13  ;;  %1842 = vmatpush1.bf16.msra.mxu1 %v3973_v59 }
 0x36c   :  { %1802 = vmatprep.subr.bf16.mxu0 %v3979_v60  ;;  %1843 = vmatprep.subr.bf16.mxu1 %v3981_v63 }
 0x36f   :  { %1803 = vmatpush1.bf16.msra.mxu0 %v3983_v2  ;;  %1844 = vmatpush1.bf16.msra.mxu1 %v3985_v4 }
 0x370   :  { %1804 = vmatprep.subr.bf16.mxu0 %v3989_v3  ;;  %1845 = vmatprep.subr.bf16.mxu1 %v3997_v29 }
 0x373   :  { %1805 = vmatpush1.bf16.msra.mxu0 %v3993_v5  ;;  %1846 = vmatpush1.bf16.msra.mxu1 %v3995_v48 }
 0x374   :  { %1806 = vmatprep.subr.bf16.mxu0 %v4000_v1  ;;  %1847 = vmatprep.subr.bf16.mxu1 %v4002_v50 }
 0x377   :  { %1807 = vmatpush1.bf16.msra.mxu0 %v4007_v9  ;;  %1848 = vmatpush1.bf16.msra.mxu1 %v4009_v49 }
 0x378   :  { %1808 = vmatprep.subr.bf16.mxu0 %v4013_v61  ;;  %1849 = vmatprep.subr.bf16.mxu1 %v4015_v52 }
 0x37b   :  { %1809 = vmatpush1.bf16.msra.mxu0 %v4019_v45  ;;  %1850 = vmatpush1.bf16.msra.mxu1 %v4021_v10 }
 0x37c   :  { %2106 = vmatprep.subr.bf16.mxu0 %v3931_v38  ;;  %2147 = vmatprep.subr.bf16.mxu1 %v3933_v46 }
 0x430   :  { %v1516_v12 = vpop.f32.mrb[28].mxu0  ;;  %v1557_v14 = vpop.f32.mrb[28].mxu1 }
 0x431   :  { %v1564_v16 = vadd.f32 %v1516_v12, %v4217_v15  ;;  %v1566_v18 = vadd.f32 %v1557_v14, %v4218_v17  ;;  %v1518_v20 = vpop.f32.mrb[29].mxu0  ;;  %v1559_v21 = vpop.f32.mrb[29].mxu1 }
 0x432   :  { %v1565_v23 = vadd.f32 %v1518_v20, %v4219_v22  ;;  %v1567_v25 = vadd.f32 %v1559_v21, %v4220_v24  ;;  %v1520_v26 = vpop.f32.mrb[30].mxu0  ;;  %v1561_v27 = vpop.f32.mrb[30].mxu1  ;;  %v4221_v20 = vld [vmem:[#allocation22_spill] sm:$0xff]  ;;  %v4222_v22 = vld [vmem:[#allocation23_spill] sm:$0xff] }
 0x433   :  { %v3044_v28 = vmul.f32 -1.442695, %v1564_v16  ;;  %v1521_v30 = vpop.f32.mrb[31].mxu0  ;;  %v1562_v31 = vpop.f32.mrb[31].mxu1  ;;  %v4223_v26 = vld [vmem:[#allocation24_spill] sm:$0xff] }
 0x434   :  { %v3045_v32 = vmul.f32 -1.442695, %v1565_v23  ;;  %v3046_v33 = vmul.f32 -1.442695, %v1567_v25 }
 0x435   :  { %3357 = vpow2.f32 %v3044_v28  ;;  %v4224_v28 = vld [vmem:[#allocation25_spill] sm:$0xff] }
 0x436   :  { %3359 = vpow2.f32 %v3045_v32 }
 0x437   :  { %3361 = vpow2.f32 %v3046_v33 }
 0x438   :  { %3363 = vtanh.f32 %v1566_v18 }
 0x43f   :  { %v3358_v34 = vpop.eup %3357 }
 0x440   :  { %v3360_v35 = vpop.eup %3359  ;;  %v1571_v36 = vadd.f32 1.0, %v3358_v34 }
 0x441   :  { %v1577_v37 = vadd.f32 1.0, %v3360_v35  ;;  %v3362_v39 = vpop.eup %3361 }
 0x442   :  { %3365 = vrcp.f32 %v1571_v36  ;;  %v3364_v40 = vpop.eup %3363  ;;  %v1584_v8 = vadd.f32 1.0, %v3362_v39 }
 0x443   :  { %3367 = vrcp.f32 %v1577_v37 }
 0x444   :  { %3369 = vrcp.f32 %v1584_v8 }
 0x44c   :  { %v3366_v41 = vpop.eup %3365 }
 0x44d   :  { %v3368_v43 = vpop.eup %3367  ;;  %v1588_v44 = vmul.f32 %v3366_v41, %v3364_v40 }
 0x44e   :  { %v1587_v19 = vmul.f32 %v3368_v43, %v3926_v42  ;;  %v3370_v14 = vpop.eup %3369 }
 0x450   :  { %v4034_v12 = vadd.f32 %v1588_v44, %v1587_v19 }
 0x452   :  { %3371 = vtanh.f32 %v4034_v12 }
 0x45c   :  { %v3372_v15 = vpop.eup %3371 }
 0x45d   :  { %v1591_v16 = vmul.f32 %v3372_v15, %v3370_v14 }
 0x45f   :  { %1593 = vst [vmem:[#allocation10 + $0x18] sm:$0xff] %v1591_v16  ;;  %v1601_v17 = vpack.c.bf16 %v1591_v16, %v1591_v16 }
 0x461   :  { %1827 = vmatmul.mubr.bf16.vlgmr.msra.gmra.mrb[32].mxu0 %v1601_v17  ;;  %1868 = vmatmul.mubr.bf16.vlgmr.msra.gmra.mrb[32].mxu1 %v1601_v17 }
 0x462   :  { %2107 = vmatpush1.bf16.msra.mxu0 %v3935_v47  ;;  %2148 = vmatpush1.bf16.msra.mxu1 %v3937_v51 }
 0x463   :  { %2108 = vmatprep.subr.bf16.mxu0 %v3943_v62  ;;  %2149 = vmatprep.subr.bf16.mxu1 %v3945_v7 }
 0x464   :  { %2138 = vmatprep.mubr.bf16.mxu0 %v4215_v6  ;;  %2179 = vmatprep.mubr.bf16.mxu1 %v4215_v6 }
 0x466   :  { %2109 = vmatpush1.bf16.msra.mxu0 %v3947_v54  ;;  %2150 = vmatpush1.bf16.msra.mxu1 %v3949_v53 }
 0x467   :  { %2110 = vmatprep.subr.bf16.mxu0 %v3955_v55  ;;  %2151 = vmatprep.subr.bf16.mxu1 %v3957_v57 }
 0x46a   :  { %2111 = vmatpush1.bf16.msra.mxu0 %v3959_v56  ;;  %2152 = vmatpush1.bf16.msra.mxu1 %v3961_v58 }
 0x46b   :  { %2112 = vmatprep.subr.bf16.mxu0 %v3967_v0  ;;  %2153 = vmatprep.subr.bf16.mxu1 %v3969_v11 }
 0x46e   :  { %2113 = vmatpush1.bf16.msra.mxu0 %v3971_v13  ;;  %2154 = vmatpush1.bf16.msra.mxu1 %v3973_v59 }
 0x46f   :  { %2114 = vmatprep.subr.bf16.mxu0 %v3979_v60  ;;  %2155 = vmatprep.subr.bf16.mxu1 %v3981_v63 }
 0x472   :  { %2115 = vmatpush1.bf16.msra.mxu0 %v3983_v2  ;;  %2156 = vmatpush1.bf16.msra.mxu1 %v3985_v4 }
 0x473   :  { %2116 = vmatprep.subr.bf16.mxu0 %v3989_v3  ;;  %2157 = vmatprep.subr.bf16.mxu1 %v3997_v29 }
 0x476   :  { %2117 = vmatpush1.bf16.msra.mxu0 %v3993_v5  ;;  %2158 = vmatpush1.bf16.msra.mxu1 %v3995_v48 }
 0x477   :  { %2118 = vmatprep.subr.bf16.mxu0 %v4000_v1  ;;  %2159 = vmatprep.subr.bf16.mxu1 %v4002_v50 }
 0x47a   :  { %2119 = vmatpush1.bf16.msra.mxu0 %v4007_v9  ;;  %2160 = vmatpush1.bf16.msra.mxu1 %v4009_v49 }
 0x47b   :  { %2120 = vmatprep.subr.bf16.mxu0 %v4013_v61  ;;  %2161 = vmatprep.subr.bf16.mxu1 %v4015_v52 }
 0x47e   :  { %2121 = vmatpush1.bf16.msra.mxu0 %v4019_v45  ;;  %2162 = vmatpush1.bf16.msra.mxu1 %v4021_v10 }
 0x47f   :  { %2418 = vmatprep.subr.bf16.mxu0 %v3931_v38  ;;  %2459 = vmatprep.subr.bf16.mxu1 %v3933_v46 }
 0x534   :  { %v1828_v42 = vpop.f32.mrb[32].mxu0  ;;  %v1869_v18 = vpop.f32.mrb[32].mxu1 }
 0x535   :  { %v1876_v21 = vadd.f32 %v1828_v42, %v4221_v20  ;;  %v1878_v23 = vadd.f32 %v1869_v18, %v4222_v22  ;;  %v1830_v24 = vpop.f32.mrb[33].mxu0  ;;  %v1871_v25 = vpop.f32.mrb[33].mxu1 }
 0x536   :  { %v1877_v27 = vadd.f32 %v1830_v24, %v4223_v26  ;;  %v1879_v30 = vadd.f32 %v1871_v25, %v4224_v28  ;;  %v1832_v31 = vpop.f32.mrb[34].mxu0  ;;  %v1873_v32 = vpop.f32.mrb[34].mxu1  ;;  %v4225_v24 = vld [vmem:[#allocation26_spill] sm:$0xff]  ;;  %v4226_v26 = vld [vmem:[#allocation27_spill] sm:$0xff] }
 0x537   :  { %v3079_v33 = vmul.f32 -1.442695, %v1876_v21  ;;  %v1833_v34 = vpop.f32.mrb[35].mxu0  ;;  %v1874_v35 = vpop.f32.mrb[35].mxu1  ;;  %v4227_v31 = vld [vmem:[#allocation28_spill] sm:$0xff] }
 0x538   :  { %v3080_v36 = vmul.f32 -1.442695, %v1877_v27  ;;  %v3081_v37 = vmul.f32 -1.442695, %v1879_v30 }
 0x539   :  { %3373 = vpow2.f32 %v3079_v33  ;;  %v4228_v33 = vld [vmem:[#allocation29_spill] sm:$0xff] }
 0x53a   :  { %3375 = vpow2.f32 %v3080_v36 }
 0x53b   :  { %3377 = vpow2.f32 %v3081_v37 }
 0x53c   :  { %3379 = vtanh.f32 %v1878_v23 }
 0x543   :  { %v3374_v39 = vpop.eup %3373 }
 0x544   :  { %v3376_v40 = vpop.eup %3375  ;;  %v1883_v41 = vadd.f32 1.0, %v3374_v39 }
 0x545   :  { %v1889_v43 = vadd.f32 1.0, %v3376_v40  ;;  %v3378_v44 = vpop.eup %3377 }
 0x546   :  { %3381 = vrcp.f32 %v1883_v41  ;;  %v3380_v8 = vpop.eup %3379  ;;  %v1896_v16 = vadd.f32 1.0, %v3378_v44 }
 0x547   :  { %3383 = vrcp.f32 %v1889_v43 }
 0x548   :  { %3385 = vrcp.f32 %v1896_v16 }
 0x550   :  { %v3382_v19 = vpop.eup %3381 }
 0x551   :  { %v3384_v14 = vpop.eup %3383  ;;  %v1900_v15 = vmul.f32 %v3382_v19, %v3380_v8 }
 0x552   :  { %v1899_v17 = vmul.f32 %v3384_v14, %v4034_v12  ;;  %v3386_v18 = vpop.eup %3385 }
 0x554   :  { %v4076_v42 = vadd.f32 %v1900_v15, %v1899_v17 }
 0x556   :  { %3387 = vtanh.f32 %v4076_v42 }
 0x560   :  { %v3388_v20 = vpop.eup %3387 }
 0x561   :  { %v1903_v21 = vmul.f32 %v3388_v20, %v3386_v18 }
 0x563   :  { %1905 = vst [vmem:[#allocation10 + $0x20] sm:$0xff] %v1903_v21  ;;  %v1913_v22 = vpack.c.bf16 %v1903_v21, %v1903_v21 }
 0x565   :  { %2139 = vmatmul.mubr.bf16.vlgmr.msra.gmra.mrb[36].mxu0 %v1913_v22  ;;  %2180 = vmatmul.mubr.bf16.vlgmr.msra.gmra.mrb[36].mxu1 %v1913_v22 }
 0x566   :  { %2419 = vmatpush1.bf16.msra.mxu0 %v3935_v47  ;;  %2460 = vmatpush1.bf16.msra.mxu1 %v3937_v51 }
 0x567   :  { %2420 = vmatprep.subr.bf16.mxu0 %v3943_v62  ;;  %2461 = vmatprep.subr.bf16.mxu1 %v3945_v7 }
 0x568   :  { %2450 = vmatprep.mubr.bf16.mxu0 %v4215_v6  ;;  %2491 = vmatprep.mubr.bf16.mxu1 %v4215_v6 }
 0x56a   :  { %2421 = vmatpush1.bf16.msra.mxu0 %v3947_v54  ;;  %2462 = vmatpush1.bf16.msra.mxu1 %v3949_v53 }
 0x56b   :  { %2422 = vmatprep.subr.bf16.mxu0 %v3955_v55  ;;  %2463 = vmatprep.subr.bf16.mxu1 %v3957_v57 }
 0x56e   :  { %2423 = vmatpush1.bf16.msra.mxu0 %v3959_v56  ;;  %2464 = vmatpush1.bf16.msra.mxu1 %v3961_v58 }
 0x56f   :  { %2424 = vmatprep.subr.bf16.mxu0 %v3967_v0  ;;  %2465 = vmatprep.subr.bf16.mxu1 %v3969_v11 }
 0x572   :  { %2425 = vmatpush1.bf16.msra.mxu0 %v3971_v13  ;;  %2466 = vmatpush1.bf16.msra.mxu1 %v3973_v59 }
 0x573   :  { %2426 = vmatprep.subr.bf16.mxu0 %v3979_v60  ;;  %2467 = vmatprep.subr.bf16.mxu1 %v3981_v63 }
 0x576   :  { %2427 = vmatpush1.bf16.msra.mxu0 %v3983_v2  ;;  %2468 = vmatpush1.bf16.msra.mxu1 %v3985_v4 }
 0x577   :  { %2428 = vmatprep.subr.bf16.mxu0 %v3989_v3  ;;  %2469 = vmatprep.subr.bf16.mxu1 %v3997_v29 }
 0x57a   :  { %2429 = vmatpush1.bf16.msra.mxu0 %v3993_v5  ;;  %2470 = vmatpush1.bf16.msra.mxu1 %v3995_v48 }
 0x57b   :  { %2430 = vmatprep.subr.bf16.mxu0 %v4000_v1  ;;  %2471 = vmatprep.subr.bf16.mxu1 %v4002_v50 }
 0x57e   :  { %2431 = vmatpush1.bf16.msra.mxu0 %v4007_v9  ;;  %2472 = vmatpush1.bf16.msra.mxu1 %v4009_v49 }
 0x57f   :  { %2432 = vmatprep.subr.bf16.mxu0 %v4013_v61  ;;  %2473 = vmatprep.subr.bf16.mxu1 %v4015_v52 }
 0x582   :  { %2433 = vmatpush1.bf16.msra.mxu0 %v4019_v45  ;;  %2474 = vmatpush1.bf16.msra.mxu1 %v4021_v10 }
 0x583   :  { %2730 = vmatprep.subr.bf16.mxu0 %v3931_v38  ;;  %2771 = vmatprep.subr.bf16.mxu1 %v3933_v46 }
 0x638   :  { %v2140_v12 = vpop.f32.mrb[36].mxu0  ;;  %v2181_v23 = vpop.f32.mrb[36].mxu1 }
 0x639   :  { %v2188_v25 = vadd.f32 %v2140_v12, %v4225_v24  ;;  %v2190_v27 = vadd.f32 %v2181_v23, %v4226_v26  ;;  %v2142_v28 = vpop.f32.mrb[37].mxu0  ;;  %v2183_v30 = vpop.f32.mrb[37].mxu1 }
 0x63a   :  { %v2189_v32 = vadd.f32 %v2142_v28, %v4227_v31  ;;  %v2191_v34 = vadd.f32 %v2183_v30, %v4228_v33  ;;  %v2144_v35 = vpop.f32.mrb[38].mxu0  ;;  %v2185_v36 = vpop.f32.mrb[38].mxu1  ;;  %v4233_v31 = vld [vmem:[#allocation34_spill] sm:$0xff]  ;;  %v4234_v33 = vld [vmem:[#allocation35_spill] sm:$0xff] }
 0x63b   :  { %v3114_v37 = vmul.f32 -1.442695, %v2188_v25  ;;  %v2145_v39 = vpop.f32.mrb[39].mxu0  ;;  %v2186_v40 = vpop.f32.mrb[39].mxu1 }
 0x63c   :  { %v3115_v38 = vmul.f32 -1.442695, %v2189_v32  ;;  %v3116_v46 = vmul.f32 -1.442695, %v2191_v34  ;;  %v4236_v40 = vld [vmem:[#allocation37_spill] sm:$0xff] }
 0x63d   :  { %3389 = vpow2.f32 %v3114_v37  ;;  %v4235_v37 = vld [vmem:[#allocation36_spill] sm:$0xff] }
 0x63e   :  { %3391 = vpow2.f32 %v3115_v38 }
 0x63f   :  { %3393 = vpow2.f32 %v3116_v46 }
 0x640   :  { %3395 = vtanh.f32 %v2190_v27 }
 0x647   :  { %v3390_v41 = vpop.eup %3389 }
 0x648   :  { %v3392_v43 = vpop.eup %3391  ;;  %v2195_v44 = vadd.f32 1.0, %v3390_v41 }
 0x649   :  { %v2201_v8 = vadd.f32 1.0, %v3392_v43  ;;  %v3394_v19 = vpop.eup %3393 }
 0x64a   :  { %3397 = vrcp.f32 %v2195_v44  ;;  %v3396_v14 = vpop.eup %3395  ;;  %v2208_v18 = vadd.f32 1.0, %v3394_v19 }
 0x64b   :  { %3399 = vrcp.f32 %v2201_v8 }
 0x64c   :  { %3401 = vrcp.f32 %v2208_v18 }
 0x654   :  { %v3398_v15 = vpop.eup %3397 }
 0x655   :  { %v3400_v16 = vpop.eup %3399  ;;  %v2212_v17 = vmul.f32 %v3398_v15, %v3396_v14 }
 0x656   :  { %v2211_v20 = vmul.f32 %v3400_v16, %v4076_v42  ;;  %v3402_v22 = vpop.eup %3401 }
 0x658   :  { %v4118_v21 = vadd.f32 %v2212_v17, %v2211_v20 }
 0x65a   :  { %3403 = vtanh.f32 %v4118_v21 }
 0x664   :  { %v3404_v12 = vpop.eup %3403 }
 0x665   :  { %v2215_v23 = vmul.f32 %v3404_v12, %v3402_v22 }
 0x667   :  { %2217 = vst [vmem:[#allocation10 + $0x28] sm:$0xff] %v2215_v23  ;;  %v2225_v24 = vpack.c.bf16 %v2215_v23, %v2215_v23 }
 0x669   :  { %2451 = vmatmul.mubr.bf16.vlgmr.msra.gmra.mrb[40].mxu0 %v2225_v24  ;;  %2492 = vmatmul.mubr.bf16.vlgmr.msra.gmra.mrb[40].mxu1 %v2225_v24 }
 0x66a   :  { %2731 = vmatpush1.bf16.msra.mxu0 %v3935_v47  ;;  %2772 = vmatpush1.bf16.msra.mxu1 %v3937_v51  ;;  %v4229_v51 = vld [vmem:[#allocation30_spill] sm:$0xff] }
 0x66b   :  { %2732 = vmatprep.subr.bf16.mxu0 %v3943_v62  ;;  %2773 = vmatprep.subr.bf16.mxu1 %v3945_v7  ;;  %v4230_v7 = vld [vmem:[#allocation31_spill] sm:$0xff] }
 0x66c   :  { %2762 = vmatprep.mubr.bf16.mxu0 %v4215_v6  ;;  %2803 = vmatprep.mubr.bf16.mxu1 %v4215_v6 }
 0x66e   :  { %2733 = vmatpush1.bf16.msra.mxu0 %v3947_v54  ;;  %2774 = vmatpush1.bf16.msra.mxu1 %v3949_v53 }
 0x66f   :  { %2734 = vmatprep.subr.bf16.mxu0 %v3955_v55  ;;  %2775 = vmatprep.subr.bf16.mxu1 %v3957_v57  ;;  %v4231_v57 = vld [vmem:[#allocation32_spill] sm:$0xff] }
 0x672   :  { %2735 = vmatpush1.bf16.msra.mxu0 %v3959_v56  ;;  %2776 = vmatpush1.bf16.msra.mxu1 %v3961_v58  ;;  %v4232_v58 = vld [vmem:[#allocation33_spill] sm:$0xff] }
 0x673   :  { %2736 = vmatprep.subr.bf16.mxu0 %v3967_v0  ;;  %2777 = vmatprep.subr.bf16.mxu1 %v3969_v11 }
 0x676   :  { %2737 = vmatpush1.bf16.msra.mxu0 %v3971_v13  ;;  %2778 = vmatpush1.bf16.msra.mxu1 %v3973_v59 }
 0x677   :  { %2738 = vmatprep.subr.bf16.mxu0 %v3979_v60  ;;  %2779 = vmatprep.subr.bf16.mxu1 %v3981_v63 }
 0x67a   :  { %2739 = vmatpush1.bf16.msra.mxu0 %v3983_v2  ;;  %2780 = vmatpush1.bf16.msra.mxu1 %v3985_v4 }
 0x67b   :  { %2740 = vmatprep.subr.bf16.mxu0 %v3989_v3  ;;  %2781 = vmatprep.subr.bf16.mxu1 %v3997_v29 }
 0x67e   :  { %2741 = vmatpush1.bf16.msra.mxu0 %v3993_v5  ;;  %2782 = vmatpush1.bf16.msra.mxu1 %v3995_v48 }
 0x67f   :  { %2742 = vmatprep.subr.bf16.mxu0 %v4000_v1  ;;  %2783 = vmatprep.subr.bf16.mxu1 %v4002_v50 }
 0x682   :  { %2743 = vmatpush1.bf16.msra.mxu0 %v4007_v9  ;;  %2784 = vmatpush1.bf16.msra.mxu1 %v4009_v49 }
 0x683   :  { %2744 = vmatprep.subr.bf16.mxu0 %v4013_v61  ;;  %2785 = vmatprep.subr.bf16.mxu1 %v4015_v52 }
 0x686   :  { %2745 = vmatpush1.bf16.msra.mxu0 %v4019_v45  ;;  %2786 = vmatpush1.bf16.msra.mxu1 %v4021_v10 }
 0x73c   :  { %v2452_v6 = vpop.f32.mrb[40].mxu0  ;;  %v2493_v47 = vpop.f32.mrb[40].mxu1 }
 0x73d   :  { %v2500_v62 = vadd.f32 %v2452_v6, %v4229_v51  ;;  %v2502_v54 = vadd.f32 %v2493_v47, %v4230_v7  ;;  %v2454_v53 = vpop.f32.mrb[41].mxu0  ;;  %v2495_v55 = vpop.f32.mrb[41].mxu1 }
 0x73e   :  { %v2501_v56 = vadd.f32 %v2454_v53, %v4231_v57  ;;  %v2503_v0 = vadd.f32 %v2495_v55, %v4232_v58  ;;  %v2456_v11 = vpop.f32.mrb[42].mxu0  ;;  %v2497_v13 = vpop.f32.mrb[42].mxu1 }
 0x73f   :  { %v3149_v59 = vmul.f32 -1.442695, %v2500_v62  ;;  %v2457_v60 = vpop.f32.mrb[43].mxu0  ;;  %v2498_v63 = vpop.f32.mrb[43].mxu1 }
 0x740   :  { %v3150_v2 = vmul.f32 -1.442695, %v2501_v56  ;;  %v3151_v4 = vmul.f32 -1.442695, %v2503_v0 }
 0x741   :  { %3405 = vpow2.f32 %v3149_v59 }
 0x742   :  { %3407 = vpow2.f32 %v3150_v2 }
 0x743   :  { %3409 = vpow2.f32 %v3151_v4 }
 0x744   :  { %3411 = vtanh.f32 %v2502_v54 }
 0x74b   :  { %v3406_v3 = vpop.eup %3405 }
 0x74c   :  { %v3408_v5 = vpop.eup %3407  ;;  %v2507_v48 = vadd.f32 1.0, %v3406_v3 }
 0x74d   :  { %v2513_v29 = vadd.f32 1.0, %v3408_v5  ;;  %v3410_v1 = vpop.eup %3409 }
 0x74e   :  { %3413 = vrcp.f32 %v2507_v48  ;;  %v3412_v50 = vpop.eup %3411  ;;  %v2520_v52 = vadd.f32 1.0, %v3410_v1 }
 0x74f   :  { %3415 = vrcp.f32 %v2513_v29 }
 0x750   :  { %3417 = vrcp.f32 %v2520_v52 }
 0x758   :  { %v3414_v9 = vpop.eup %3413 }
 0x759   :  { %v3416_v49 = vpop.eup %3415  ;;  %v2524_v61 = vmul.f32 %v3414_v9, %v3412_v50 }
 0x75a   :  { %v2523_v45 = vmul.f32 %v3416_v49, %v4118_v21  ;;  %v3418_v42 = vpop.eup %3417 }
 0x75c   :  { %v2525_v10 = vadd.f32 %v2524_v61, %v2523_v45 }
 0x75e   :  { %3419 = vtanh.f32 %v2525_v10 }
 0x768   :  { %v3420_v25 = vpop.eup %3419 }
 0x769   :  { %v2527_v26 = vmul.f32 %v3420_v25, %v3418_v42 }
 0x76b   :  { %2529 = vst [vmem:[#allocation10 + $0x30] sm:$0xff] %v2527_v26  ;;  %v2537_v27 = vpack.c.bf16 %v2527_v26, %v2527_v26 }
 0x76d   :  { %2763 = vmatmul.mubr.bf16.vlgmr.msra.gmra.mrb[44].mxu0 %v2537_v27  ;;  %2804 = vmatmul.mubr.bf16.vlgmr.msra.gmra.mrb[44].mxu1 %v2537_v27 }
 0x840   :  { %v2764_v28 = vpop.f32.mrb[44].mxu0  ;;  %v2805_v30 = vpop.f32.mrb[44].mxu1 }
 0x841   :  { %v2812_v32 = vadd.f32 %v2764_v28, %v4233_v31  ;;  %v2814_v34 = vadd.f32 %v2805_v30, %v4234_v33  ;;  %v2766_v35 = vpop.f32.mrb[45].mxu0  ;;  %v2807_v36 = vpop.f32.mrb[45].mxu1 }
 0x842   :  { %v2813_v39 = vadd.f32 %v2766_v35, %v4235_v37  ;;  %v2815_v38 = vadd.f32 %v2807_v36, %v4236_v40  ;;  %v2768_v46 = vpop.f32.mrb[46].mxu0  ;;  %v2809_v41 = vpop.f32.mrb[46].mxu1 }
 0x843   :  { %v3184_v43 = vmul.f32 -1.442695, %v2812_v32  ;;  %v2769_v44 = vpop.f32.mrb[47].mxu0  ;;  %v2810_v8 = vpop.f32.mrb[47].mxu1 }
 0x844   :  { %v3185_v19 = vmul.f32 -1.442695, %v2813_v39  ;;  %v3186_v14 = vmul.f32 -1.442695, %v2815_v38 }
 0x845   :  { %3421 = vpow2.f32 %v3184_v43 }
 0x846   :  { %3423 = vpow2.f32 %v3185_v19 }
 0x847   :  { %3425 = vpow2.f32 %v3186_v14 }
 0x848   :  { %3427 = vtanh.f32 %v2814_v34 }
 0x84f   :  { %v3422_v15 = vpop.eup %3421 }
 0x850   :  { %v3424_v16 = vpop.eup %3423  ;;  %v2819_v17 = vadd.f32 1.0, %v3422_v15 }
 0x851   :  { %v2825_v18 = vadd.f32 1.0, %v3424_v16  ;;  %v3426_v20 = vpop.eup %3425 }
 0x852   :  { %3429 = vrcp.f32 %v2819_v17  ;;  %v3428_v21 = vpop.eup %3427  ;;  %v2832_v24 = vadd.f32 1.0, %v3426_v20 }
 0x853   :  { %3431 = vrcp.f32 %v2825_v18 }
 0x854   :  { %3433 = vrcp.f32 %v2832_v24 }
 0x85c   :  { %v3430_v22 = vpop.eup %3429 }
 0x85d   :  { %v3432_v12 = vpop.eup %3431  ;;  %v2836_v23 = vmul.f32 %v3430_v22, %v3428_v21 }
 0x85e   :  { %v2835_v6 = vmul.f32 %v3432_v12, %v2525_v10 }
 0x860   :  { %v2837_v47 = vadd.f32 %v2836_v23, %v2835_v6 }
 0x862   :  { %3435 = vtanh.f32 %v2837_v47  ;;  %2847 = vst [vmem:[#allocation11] sm:$0xff] %v2837_v47 }
 0x863   :  { %3492 = shalt.err (!%p3489_p6)
}
 0x864   :  { %s3493_s30 = scalar_lea.hbm %s4191_s5, 128 }
 0x865   :  { %p3494_p7 = scmp.ne.s32.totalorder %s4191_s5, %s3493_s30  ;;  %p3497_p8 = scmp.lt.u32.totalorder %s3493_s30, %s4191_s5 }
 0x867   :  { %p3499_p9 = pnand %p3497_p8, %p3494_p7 }
 0x869   :  { %3502 = shalt.err (!%p3499_p9)
}
 0x86a   :  { %2869 = dma.vmem_to_hbm [thread:$0]  %s2867_s26, 128, %s4191_s5, [#allocation12]   ;;  %v3434_v51 = vpop.eup %3433 }
 0x86b   :  { %s3540_s12 = smov [#allocation10]  }
 0x86c   :  { %s2853_s13 = sshll.u32 %s3540_s12, 4  ;;  %v3436_v62 = vpop.eup %3435  ;;  %s2854_s13 = int_to_ptr.vmem [resolvable:$true] %s2853_s13 }
 0x86d   :  { %v2839_v7 = vmul.f32 %v3436_v62, %v3434_v51  ;;  %s3503_s14 = scalar_lea.vmem %s2854_s13, 1024  ;;  %p3508_p11 = scmp.lt.s32.totalorder %s2854_s13, %s2854_s13 }
 0x86e   :  { %p3504_p10 = scmp.ne.s32.totalorder %s2854_s13, %s3503_s14  ;;  %p3509_p12 = scmp.lt.s32.totalorder %s3503_s14, %s3503_s14 }
 0x86f   :  { %2841 = vst [vmem:[#allocation10 + $0x38] sm:$0xff] %v2839_v7 }
 0x870   :  { %p3510_p13 = por %p3509_p12, %p3508_p11 }
 0x872   :  { %p3511_p0 = pnand %p3510_p13, %p3504_p10 }
 0x874   :  { %3514 = shalt.err (!%p3511_p0)
}
 0x875   :  { %s3515_s1 = scalar_lea.hbm %s4190_s4, 1024 }
 0x876   :  { %p3516_p1 = scmp.ne.s32.totalorder %s4190_s4, %s3515_s1  ;;  %p3519_p2 = scmp.lt.u32.totalorder %s3515_s1, %s4190_s4 }
 0x878   :  { %p3521_p3 = pnand %p3519_p2, %p3516_p1 }
 0x87a   :  { %3524 = shalt.err (!%p3521_p3)
}
 0x87b   :  { %s3541_s19 = smov 128   ;;  %s3542_s20 = smov 8  }
 0x87c   :  { %2859 = dma.vmem_to_hbm [thread:$0]  %s2854_s13, 1024, %s4190_s4, [#allocation7], %s3541_s19, %s3541_s19, %s3542_s20  }
 0x87d   :  { %3529 = dma.done.wait [#allocation7], 1024  }
 0x87e   :  { %3530 = vsyncadd [#allocation7], 4294966272 }
 0x87f   :  { %3531 = dma.done.wait [#allocation12], 128  }
 0x880   :  { %3532 = vsyncadd [#allocation12], 4294967168 }
 0x881   :  { %2876 = vsyncpa [#allocation6], 1 }
 0x882   :  { %2877 = vsyncpa [#allocation9], 1 }
 0x883   :  { %2878 = vsyncpa [#allocation7], 1 }
 0x884   :  { %2879 = vsyncpa [#allocation12], 1 }

</bundles_post_ra>
